<compile_context>
chip_gen: v7x
topology: tpu7x:2x2x1
jax: 0.10.0
libtpu: 0.0.40
codegen_flags: <defaults>
</compile_context>

<pallas_src>
import functools
import math

import jax
import jax.numpy as jnp
from jax import lax
from jax.experimental import pallas as pl
from jax.experimental.pallas import tpu as pltpu


_LANE = 128              # lane tile width (last dim)
_BATCH_ALIGN = 16        # bf16 sublane packing: keeps dynamic row offsets tile-aligned
_VMEM_LIMIT = 48 * 1024 * 1024     # fits v5e/v6e (128 MiB) and leaves headroom on v7x (64 MiB/TC)
_CHUNK_BUDGET = 28 * 1024 * 1024   # per-grid-step block budget used to size time chunks


def _round_up(n, m):
    return ((n + m - 1) // m) * m


def _pad2(a, shape):
    out = jnp.zeros(shape, a.dtype)
    return out.at[: a.shape[0], : a.shape[1]].set(a)


# ----------------------------------------------------------------------------
# Pallas kernel: one RNN layer, both directions fused, streamed over time chunks.
# ----------------------------------------------------------------------------
def _rnn_layer_kernel(*refs, cT, B, H_pad, num_dir, n_fb, fuse_fc, nc):
    """One tanh-RNN layer.  Grid = (nc,) sequential chunks of cT time steps.

    Per grid step c the forward chain consumes time-block c and the reverse
    chain consumes time-block nc-1-c (opposite BlockSpec streams); hidden state
    carries in scratch.  Ref layout:
      activation streams            num_dir * n_fb   (cT*B, W_fb)
      W_ih blocks                   num_dir * n_fb   (W_fb, H_pad)   bf16
      W_hh block-diagonal           (num_dir*H_pad, num_dir*H_pad)   bf16
      biases                        num_dir          (1, H_pad)      f32
      [W_fc, b_fc]                  (num_dir*H_pad, O_pad) bf16 / (1, O_pad) f32
      out_fwd[, out_rev]            (cT*B, H_pad)    bf16 blocks
      [fc_out]                      (B, O_pad)       f32
      h_scr / pre_scr / [hlast_scr] scratch
    """
    pos = 0
    act = []
    for _ in range(num_dir):
        act.append(list(refs[pos:pos + n_fb])); pos += n_fb
    wih = []
    for _ in range(num_dir):
        wih.append(list(refs[pos:pos + n_fb])); pos += n_fb
    whh_ref = refs[pos]; pos += 1
    bias = list(refs[pos:pos + num_dir]); pos += num_dir
    if fuse_fc:
        wfc_ref, bfc_ref = refs[pos], refs[pos + 1]; pos += 2
    out_refs = list(refs[pos:pos + num_dir]); pos += num_dir
    if fuse_fc:
        fc_ref = refs[pos]; pos += 1
    h_scr = refs[pos]; pre_scr = refs[pos + 1]; pos += 2
    hlast_scr = refs[pos] if (fuse_fc and num_dir == 2) else None

    c = pl.program_id(0)

    @pl.when(c == 0)
    def _():
        h_scr[...] = jnp.zeros_like(h_scr)        # h0 = 0 (matches the module)

    # --- Chunk input projection, hoisted out of the serial recurrence:
    #     one (cT*B, W)@(W, H_pad) bf16 matmul per direction per feature block,
    #     bias folded in here; stored to bf16 scratch.
    for d in range(num_dir):
        acc = None
        for fb in range(n_fb):
            p = jnp.dot(act[d][fb][...].astype(jnp.bfloat16), wih[d][fb][...],
                        preferred_element_type=jnp.float32)
            acc = p if acc is None else acc + p
        pre_scr[:, d * H_pad:(d + 1) * H_pad] = (acc + bias[d][...]).astype(pre_scr.dtype)

    def step(j):
        static = isinstance(j, int)
        rowf = j * B if static else pl.multiple_of(j * B, B)
        rowr = (cT - 1 - j) * B if static else pl.multiple_of((cT - 1 - j) * B, B)
        if num_dir == 2:
            pre = jnp.concatenate(
                [pre_scr[pl.ds(rowf, B), pl.ds(0, H_pad)],
                 pre_scr[pl.ds(rowr, B), pl.ds(H_pad, H_pad)]], axis=-1)
        else:
            pre = pre_scr[pl.ds(rowf, B), :]
        # Fused fwd+rev recurrence: a single (B, nd*H_pad)@(nd*H_pad, nd*H_pad)
        # bf16 matmul against the block-diagonal W_hh.  whh_ref is indexed inside
        # the dot so the weight is not pinned in vregs across the unrolled loop.
        h_new = jnp.tanh(
            pre.astype(jnp.float32)
            + jnp.dot(h_scr[...].astype(jnp.bfloat16), whh_ref[...],
                      preferred_element_type=jnp.float32))
        h_scr[...] = h_new
        out_refs[0][pl.ds(rowf, B), :] = h_new[:, 0:H_pad].astype(out_refs[0].dtype)
        if num_dir == 2:
            out_refs[1][pl.ds(rowr, B), :] = h_new[:, H_pad:2 * H_pad].astype(out_refs[1].dtype)
            if hlast_scr is not None:
                # Capture h_rev at global time T-1 (first reverse step of chunk 0)
                # for the fused final Linear.
                if static:
                    if j == 0:
                        @pl.when(c == 0)
                        def _():
                            hlast_scr[...] = h_new[:, H_pad:2 * H_pad]
                else:
                    @pl.when(jnp.logical_and(c == 0, j == 0))
                    def _():
                        hlast_scr[...] = h_new[:, H_pad:2 * H_pad]

    if cT <= 64:
        for j in range(cT):               # static unroll: full scheduler visibility
            step(j)
    else:
        def body(j, carry):
            step(j)
            return carry
        lax.fori_loop(0, cT, body, 0, unroll=4)

    if fuse_fc:
        @pl.when(c == nc - 1)
        def _():
            hs = h_scr[...]
            if num_dir == 2:
                fc_in = jnp.concatenate([hs[:, 0:H_pad], hlast_scr[...]], axis=-1)
            else:
                fc_in = hs
            fc_ref[...] = (
                jnp.dot(fc_in.astype(jnp.bfloat16), wfc_ref[...],
                        preferred_element_type=jnp.float32)
                + bfc_ref[...])


# ----------------------------------------------------------------------------
# pallas_call wrapper for one layer
# ----------------------------------------------------------------------------
def run_rnn_layer(fb_arrays, layer_params, *, T, B, H_pad, num_dir, chunk_T,
                  fc_params=None):
    # TODO(synk): on v7x, split the direction axis across the two TensorCores
    # (grid=(2,) "parallel" / core_map) so each core runs one recurrence chain.
    # TODO(synk): on v5e, keep per-direction 128x128 W_hh resident in the MXU via
    # pltpu.matmul_push_rhs instead of the block-diagonal fused weight.
    wih_list, whh_bd, bias_list = layer_params
    n_fb = len(fb_arrays)
    fuse_fc = fc_params is not None
    cT = chunk_T
    nc = T // cT
    assert nc * cT == T

    def fwd_map(c): return (c, 0)
    def rev_map(c): return (nc - 1 - c, 0)
    def full_map(c): return (0, 0)

    inputs, in_specs = [], []
    # Activation streams: fwd chain reads block c, rev chain reads block nc-1-c.
    for d in range(num_dir):
        imap = fwd_map if d == 0 else rev_map
        for arr in fb_arrays:
            inputs.append(arr)
            in_specs.append(pl.BlockSpec((cT * B, arr.shape[1]), imap))
    for d in range(num_dir):
        for w in wih_list[d]:
            inputs.append(w)
            in_specs.append(pl.BlockSpec(w.shape, full_map))
    inputs.append(whh_bd)
    in_specs.append(pl.BlockSpec(whh_bd.shape, full_map))
    for d in range(num_dir):
        inputs.append(bias_list[d])
        in_specs.append(pl.BlockSpec(bias_list[d].shape, full_map))
    if fuse_fc:
        wfc, bfc = fc_params
        inputs += [wfc, bfc]
        in_specs += [pl.BlockSpec(wfc.shape, full_map),
                     pl.BlockSpec(bfc.shape, full_map)]

    out_shapes = [jax.ShapeDtypeStruct((T * B, H_pad), jnp.bfloat16)
                  for _ in range(num_dir)]
    out_specs = [pl.BlockSpec((cT * B, H_pad), fwd_map)]
    if num_dir == 2:
        out_specs.append(pl.BlockSpec((cT * B, H_pad), rev_map))
    if fuse_fc:
        out_shapes.append(jax.ShapeDtypeStruct((B, wfc.shape[1]), jnp.float32))
        out_specs.append(pl.BlockSpec((B, wfc.shape[1]), full_map))

    scratch = [pltpu.VMEM((B, num_dir * H_pad), jnp.float32),        # h carry (f32)
               pltpu.VMEM((cT * B, num_dir * H_pad), jnp.bfloat16)]  # chunk projection
    if fuse_fc and num_dir == 2:
        scratch.append(pltpu.VMEM((B, H_pad), jnp.float32))          # h_rev at t=T-1

    kernel = functools.partial(_rnn_layer_kernel, cT=cT, B=B, H_pad=H_pad,
                               num_dir=num_dir, n_fb=n_fb, fuse_fc=fuse_fc, nc=nc)

    return pl.pallas_call(
        kernel,
        out_shape=tuple(out_shapes),
        grid_spec=pltpu.PrefetchScalarGridSpec(
            num_scalar_prefetch=0,
            grid=(nc,),
            in_specs=in_specs,
            out_specs=tuple(out_specs),
            scratch_shapes=scratch),
        compiler_params=pltpu.CompilerParams(
            dimension_semantics=("arbitrary",),
            vmem_limit_bytes=_VMEM_LIMIT),
    )(*inputs)


def _choose_chunk_T(T, B, widths, H_pad, num_dir, in_bytes, budget=_CHUNK_BUDGET):
    """Largest divisor of T whose double-buffered blocks fit the VMEM budget."""
    def usage(cT):
        rows = cT * B
        act = 2 * num_dir * sum(widths) * rows * in_bytes     # pipelined input streams
        out = 2 * num_dir * H_pad * rows * 2                  # pipelined bf16 outputs
        pre = rows * num_dir * H_pad * 2                      # bf16 projection scratch
        return act + out + pre
    best = 1
    for cT in range(1, T + 1):
        if T % cT == 0 and usage(cT) <= budget:
            best = cT
    return best


# ----------------------------------------------------------------------------
# Parameters: PyTorch-shaped init + one-time padding / transposing / casting
# ----------------------------------------------------------------------------
def init_params(key, config):
    """PyTorch-shaped params: uniform(-k, k), k = 1/sqrt(hidden_size)."""
    H = config["hidden_size"]
    D = config["input_size"]
    O = config["output_size"]
    L = config["num_layers"]
    num_dir = 2 if config["bidirectional"] else 1
    k = 1.0 / math.sqrt(H)

    params = {"rnn": {}, "fc": None}
    for l in range(L):
        in_feat = D if l == 0 else num_dir * H
        for d in range(num_dir):
            key, k1, k2, k3, k4 = jax.random.split(key, 5)
            w_ih = jax.random.uniform(k1, (H, in_feat), jnp.float32, -k, k)
            w_hh = jax.random.uniform(k2, (H, H), jnp.float32, -k, k)
            b_ih = jax.random.uniform(k3, (H,), jnp.float32, -k, k)
            b_hh = jax.random.uniform(k4, (H,), jnp.float32, -k, k)
            params["rnn"][(l, d)] = (w_ih, w_hh, b_ih, b_hh)
    key, k1, k2 = jax.random.split(key, 3)
    kf = 1.0 / math.sqrt(num_dir * H)
    w_fc = jax.random.uniform(k1, (O, num_dir * H), jnp.float32, -kf, kf)
    b_fc = jax.random.uniform(k2, (O,), jnp.float32, -kf, kf)
    params["fc"] = (w_fc, b_fc)
    return params


def prepare_params(params, config):
    """One-time: transpose weights, sum biases, zero-pad H/O to 128 lanes,
    build the block-diagonal W_hh, cast MXU operands to bf16.  Zero padding keeps
    padded lanes exactly 0 (tanh(0)=0); padded batch rows are junk but unused."""
    H = config["hidden_size"]
    D = config["input_size"]
    O = config["output_size"]
    L = config["num_layers"]
    num_dir = 2 if config["bidirectional"] else 1
    H_pad = _round_up(H, _LANE)
    O_pad = _round_up(O, _LANE)

    layers = []
    for l in range(L):
        wih_list, bias_list = [], []
        whh_bd = jnp.zeros((num_dir * H_pad, num_dir * H_pad), jnp.float32)
        for d in range(num_dir):
            w_ih, w_hh, b_ih, b_hh = params["rnn"][(l, d)]
            w_ih_t = jnp.transpose(w_ih)                       # (in_feat, H)
            if l == 0:
                blocks = [_pad2(w_ih_t, (D, H_pad))]           # one feature block: x
            else:
                # Previous layer provides separate fwd/rev activation arrays.
                blocks = [_pad2(w_ih_t[k * H:(k + 1) * H, :], (H_pad, H_pad))
                          for k in range(num_dir)]
            wih_list.append([b.astype(jnp.bfloat16) for b in blocks])
            whh_bd = whh_bd.at[d * H_pad:d * H_pad + H,
                               d * H_pad:d * H_pad + H].set(jnp.transpose(w_hh))
            bias_list.append(_pad2((b_ih + b_hh)[None, :], (1, H_pad)).astype(jnp.float32))
        layers.append((wih_list, whh_bd.astype(jnp.bfloat16), bias_list))

    w_fc, b_fc = params["fc"]                                  # (O, num_dir*H), (O,)
    w_fc_t = jnp.transpose(w_fc)                               # (num_dir*H, O)
    fc_blocks = [_pad2(w_fc_t[k * H:(k + 1) * H, :], (H_pad, O_pad))
                 for k in range(num_dir)]
    wfc = jnp.concatenate(fc_blocks, axis=0).astype(jnp.bfloat16)
    bfc = _pad2(b_fc[None, :], (1, O_pad)).astype(jnp.float32)

    return {"layers": layers, "fc": (wfc, bfc), "num_dir": num_dir,
            "num_layers": L, "H_pad": H_pad, "O": O, "O_pad": O_pad}


# ----------------------------------------------------------------------------
# Forward pass equivalent to rnn.forward(x)
# ----------------------------------------------------------------------------
def rnn_forward(x, prepped, config):
    """Multi-layer (bi)directional tanh RNN with h0=0, then fc(out[:, -1, :])."""
    if config.get("batch_first", True):
        x_tm = jnp.transpose(x, (1, 0, 2))                     # (T, B, D)
    else:
        x_tm = x
    T, B, D = x_tm.shape
    B_pad = _round_up(B, _BATCH_ALIGN)
    if B_pad != B:
        x_tm = jnp.pad(x_tm, ((0, 0), (0, B_pad - B), (0, 0)))
    fb_arrays = [x_tm.reshape(T * B_pad, D)]                   # time-major, flattened

    num_dir = prepped["num_dir"]
    L = prepped["num_layers"]
    H_pad = prepped["H_pad"]

    for l in range(L):
        last = (l == L - 1)
        widths = [a.shape[1] for a in fb_arrays]
        in_bytes = 4 if l == 0 else 2
        cT = _choose_chunk_T(T, B_pad, widths, H_pad, num_dir, in_bytes)
        outs = run_rnn_layer(fb_arrays, prepped["layers"][l], T=T, B=B_pad,
                             H_pad=H_pad, num_dir=num_dir, chunk_T=cT,
                             fc_params=prepped["fc"] if last else None)
        if last:
            fc_out = outs[-1]
            return fc_out[:B, : prepped["O"]]
        fb_arrays = list(outs[:num_dir])


# ----------------------------------------------------------------------------
# Pure-JAX reference (mirrors PyTorch nn.RNN + Linear) for a sanity check
# ----------------------------------------------------------------------------
def _reference_forward(x, params, config):
    H = config["hidden_size"]
    L = config["num_layers"]
    num_dir = 2 if config["bidirectional"] else 1
    xs = jnp.transpose(x, (1, 0, 2)) if config.get("batch_first", True) else x
    T, B, _ = xs.shape
    layer_in = xs
    for l in range(L):
        outs = []
        for d in range(num_dir):
            w_ih, w_hh, b_ih, b_hh = params["rnn"][(l, d)]
            seq = layer_in if d == 0 else layer_in[::-1]

            def step(h, x_t):
                h_new = jnp.tanh(x_t @ w_ih.T + b_ih + h @ w_hh.T + b_hh)
                return h_new, h_new

            _, hs = lax.scan(step, jnp.zeros((B, H), jnp.float32), seq)
            outs.append(hs if d == 0 else hs[::-1])
        layer_in = jnp.concatenate(outs, axis=-1)
    w_fc, b_fc = params["fc"]
    return layer_in[-1] @ w_fc.T + b_fc


if __name__ == "__main__":
    config = {
        "input_size": 4,
        "output_size": 3,
        "hidden_size": 32,
        "num_layers": 2,
        "bidirectional": True,
        "batch_first": True,
        "device": None,
    }
    key = jax.random.PRNGKey(0)
    key, xkey = jax.random.split(key)
    B, T = 2, 8
    x = jax.random.normal(xkey, (B, T, config["input_size"]), jnp.float32)

    params = init_params(key, config)
    prepped = prepare_params(params, config)

    out = rnn_forward(x, prepped, config)
    jax.block_until_ready(out)
    assert out.shape == (B, config["output_size"])

    ref = _reference_forward(x, params, config)
    assert bool(jnp.allclose(out, ref, atol=5e-2, rtol=5e-2)), (out, ref)
    print("KERNEL_OK")
</pallas_src>

<mosaic_0001>
module attributes {stable_mosaic.version = 11 : i64} {
  func.func @_rnn_layer_kernel(%arg0: i32, %arg1: memref<128x4xf32, #tpu.memory_space<vmem>>, %arg2: memref<128x4xf32, #tpu.memory_space<vmem>>, %arg3: memref<4x128xbf16, #tpu.memory_space<vmem>>, %arg4: memref<4x128xbf16, #tpu.memory_space<vmem>>, %arg5: memref<256x256xbf16, #tpu.memory_space<vmem>>, %arg6: memref<1x128xf32, #tpu.memory_space<vmem>>, %arg7: memref<1x128xf32, #tpu.memory_space<vmem>>, %arg8: memref<128x128xbf16, #tpu.memory_space<vmem>>, %arg9: memref<128x128xbf16, #tpu.memory_space<vmem>>, %arg10: memref<16x256xf32, #tpu.memory_space<vmem>>, %arg11: memref<128x256xbf16, #tpu.memory_space<vmem>>) attributes {dimension_semantics = [#tpu.dimension_semantics<arbitrary>], iteration_bounds = array<i64: 1>, scalar_prefetch = 0 : i64, scratch_operands = 2 : i64, tpu.core_type = #tpu.core_type<tc>, window_params = [{transform_indices = @transform_0, window_bounds = array<i64: 128, 4>}, {transform_indices = @transform_1, window_bounds = array<i64: 128, 4>}, {pipeline_mode = #tpu.pipeline_mode<synchronous>, transform_indices = @transform_2, window_bounds = array<i64: 4, 128>}, {pipeline_mode = #tpu.pipeline_mode<synchronous>, transform_indices = @transform_3, window_bounds = array<i64: 4, 128>}, {pipeline_mode = #tpu.pipeline_mode<synchronous>, transform_indices = @transform_4, window_bounds = array<i64: 256, 256>}, {pipeline_mode = #tpu.pipeline_mode<synchronous>, transform_indices = @transform_5, window_bounds = array<i64: 1, 128>}, {pipeline_mode = #tpu.pipeline_mode<synchronous>, transform_indices = @transform_6, window_bounds = array<i64: 1, 128>}, {transform_indices = @transform_7, window_bounds = array<i64: 128, 128>}, {transform_indices = @transform_8, window_bounds = array<i64: 128, 128>}]} {
    %c0_i32 = arith.constant 0 : i32
    %0 = arith.cmpi eq, %arg0, %c0_i32 : i32
    %1 = arith.extui %0 : i1 to i32
    %c0_i32_0 = arith.constant 0 : i32
    %2 = arith.cmpi ne, %1, %c0_i32_0 : i32
    scf.if %2 {
      %cst_129 = arith.constant 0.000000e+00 : f32
      %157 = vector.broadcast %cst_129 : f32 to vector<16x256xf32>
      %c0_130 = arith.constant 0 : index
      %c0_131 = arith.constant 0 : index
      %158 = vector.load %arg10[%c0_130, %c0_131] : memref<16x256xf32, #tpu.memory_space<vmem>>, vector<16x256xf32>
      tpu.vector_store %arg10[%c0_130, %c0_131], %157 {strides = array<i32>} : memref<16x256xf32, #tpu.memory_space<vmem>>, vector<16x256xf32>,
    } else {
    }
    %c0 = arith.constant 0 : index
    %c0_1 = arith.constant 0 : index
    %3 = vector.load %arg1[%c0, %c0_1] : memref<128x4xf32, #tpu.memory_space<vmem>>, vector<128x4xf32>
    %4 = arith.truncf %3 : vector<128x4xf32> to vector<128x4xbf16>
    %c0_2 = arith.constant 0 : index
    %c0_3 = arith.constant 0 : index
    %5 = vector.load %arg3[%c0_2, %c0_3] : memref<4x128xbf16, #tpu.memory_space<vmem>>, vector<4x128xbf16>
    %cst = arith.constant dense<0.000000e+00> : vector<128x128xf32>
    %6 = tpu.matmul %4, %5, %cst {dimension_numbers = #tpu.dot_dimension_numbers<[1], [0], [0], [1], [0, 0, 1, 1], [], []>} : vector<128x4xbf16>, vector<4x128xbf16>, vector<128x128xf32> -> vector<128x128xf32>
    %c0_4 = arith.constant 0 : index
    %c0_5 = arith.constant 0 : index
    %7 = vector.load %arg6[%c0_4, %c0_5] : memref<1x128xf32, #tpu.memory_space<vmem>>, vector<1x128xf32>
    %8 = vector.broadcast %7 : vector<1x128xf32> to vector<128x128xf32>
    %9 = arith.addf %6, %8 : vector<128x128xf32>
    %10 = arith.truncf %9 : vector<128x128xf32> to vector<128x128xbf16>
    %c0_6 = arith.constant 0 : index
    %c0_7 = arith.constant 0 : index
    %11 = vector.load %arg11[%c0_6, %c0_7] : memref<128x256xbf16, #tpu.memory_space<vmem>>, vector<128x128xbf16>
    tpu.vector_store %arg11[%c0_6, %c0_7], %10 {strides = array<i32>} : memref<128x256xbf16, #tpu.memory_space<vmem>>, vector<128x128xbf16>,
    %c0_8 = arith.constant 0 : index
    %c0_9 = arith.constant 0 : index
    %12 = vector.load %arg2[%c0_8, %c0_9] : memref<128x4xf32, #tpu.memory_space<vmem>>, vector<128x4xf32>
    %13 = arith.truncf %12 : vector<128x4xf32> to vector<128x4xbf16>
    %c0_10 = arith.constant 0 : index
    %c0_11 = arith.constant 0 : index
    %14 = vector.load %arg4[%c0_10, %c0_11] : memref<4x128xbf16, #tpu.memory_space<vmem>>, vector<4x128xbf16>
    %cst_12 = arith.constant dense<0.000000e+00> : vector<128x128xf32>
    %15 = tpu.matmul %13, %14, %cst_12 {dimension_numbers = #tpu.dot_dimension_numbers<[1], [0], [0], [1], [0, 0, 1, 1], [], []>} : vector<128x4xbf16>, vector<4x128xbf16>, vector<128x128xf32> -> vector<128x128xf32>
    %c0_13 = arith.constant 0 : index
    %c0_14 = arith.constant 0 : index
    %16 = vector.load %arg7[%c0_13, %c0_14] : memref<1x128xf32, #tpu.memory_space<vmem>>, vector<1x128xf32>
    %17 = vector.broadcast %16 : vector<1x128xf32> to vector<128x128xf32>
    %18 = arith.addf %15, %17 : vector<128x128xf32>
    %19 = arith.truncf %18 : vector<128x128xf32> to vector<128x128xbf16>
    %c0_15 = arith.constant 0 : index
    %c128 = arith.constant 128 : index
    %20 = vector.load %arg11[%c0_15, %c128] : memref<128x256xbf16, #tpu.memory_space<vmem>>, vector<128x128xbf16>
    tpu.vector_store %arg11[%c0_15, %c128], %19 {strides = array<i32>} : memref<128x256xbf16, #tpu.memory_space<vmem>>, vector<128x128xbf16>,
    %c0_16 = arith.constant 0 : index
    %c0_17 = arith.constant 0 : index
    %21 = vector.load %arg11[%c0_16, %c0_17] : memref<128x256xbf16, #tpu.memory_space<vmem>>, vector<16x128xbf16>
    %c112 = arith.constant 112 : index
    %c128_18 = arith.constant 128 : index
    %22 = vector.load %arg11[%c112, %c128_18] : memref<128x256xbf16, #tpu.memory_space<vmem>>, vector<16x128xbf16>
    %23 = tpu.concatenate %21, %22 in 1 : vector<16x128xbf16>, vector<16x128xbf16> -> vector<16x256xbf16>
    %24 = arith.extf %23 : vector<16x256xbf16> to vector<16x256xf32>
    %c0_19 = arith.constant 0 : index
    %c0_20 = arith.constant 0 : index
    %25 = vector.load %arg10[%c0_19, %c0_20] : memref<16x256xf32, #tpu.memory_space<vmem>>, vector<16x256xf32>
    %26 = arith.truncf %25 : vector<16x256xf32> to vector<16x256xbf16>
    %c0_21 = arith.constant 0 : index
    %c0_22 = arith.constant 0 : index
    %27 = vector.load %arg5[%c0_21, %c0_22] : memref<256x256xbf16, #tpu.memory_space<vmem>>, vector<256x256xbf16>
    %cst_23 = arith.constant dense<0.000000e+00> : vector<16x256xf32>
    %28 = tpu.matmul %26, %27, %cst_23 {dimension_numbers = #tpu.dot_dimension_numbers<[1], [0], [0], [1], [0, 0, 1, 1], [], []>} : vector<16x256xbf16>, vector<256x256xbf16>, vector<16x256xf32> -> vector<16x256xf32>
    %29 = arith.addf %24, %28 : vector<16x256xf32>
    %30 = math.tanh %29 : vector<16x256xf32>
    %c0_24 = arith.constant 0 : index
    %c0_25 = arith.constant 0 : index
    %31 = vector.load %arg10[%c0_24, %c0_25] : memref<16x256xf32, #tpu.memory_space<vmem>>, vector<16x256xf32>
    tpu.vector_store %arg10[%c0_24, %c0_25], %30 {strides = array<i32>} : memref<16x256xf32, #tpu.memory_space<vmem>>, vector<16x256xf32>,
    %32 = vector.extract_strided_slice %30 {offsets = [0, 0], sizes = [16, 128], strides = [1, 1]} : vector<16x256xf32> to vector<16x128xf32>
    %33 = arith.truncf %32 : vector<16x128xf32> to vector<16x128xbf16>
    %c0_26 = arith.constant 0 : index
    %c0_27 = arith.constant 0 : index
    %34 = vector.load %arg8[%c0_26, %c0_27] : memref<128x128xbf16, #tpu.memory_space<vmem>>, vector<16x128xbf16>
    tpu.vector_store %arg8[%c0_26, %c0_27], %33 {strides = array<i32>} : memref<128x128xbf16, #tpu.memory_space<vmem>>, vector<16x128xbf16>,
    %35 = vector.extract_strided_slice %30 {offsets = [0, 128], sizes = [16, 128], strides = [1, 1]} : vector<16x256xf32> to vector<16x128xf32>
    %36 = arith.truncf %35 : vector<16x128xf32> to vector<16x128xbf16>
    %c112_28 = arith.constant 112 : index
    %c0_29 = arith.constant 0 : index
    %37 = vector.load %arg9[%c112_28, %c0_29] : memref<128x128xbf16, #tpu.memory_space<vmem>>, vector<16x128xbf16>
    tpu.vector_store %arg9[%c112_28, %c0_29], %36 {strides = array<i32>} : memref<128x128xbf16, #tpu.memory_space<vmem>>, vector<16x128xbf16>,
    %c16 = arith.constant 16 : index
    %c0_30 = arith.constant 0 : index
    %38 = vector.load %arg11[%c16, %c0_30] : memref<128x256xbf16, #tpu.memory_space<vmem>>, vector<16x128xbf16>
    %c96 = arith.constant 96 : index
    %c128_31 = arith.constant 128 : index
    %39 = vector.load %arg11[%c96, %c128_31] : memref<128x256xbf16, #tpu.memory_space<vmem>>, vector<16x128xbf16>
    %40 = tpu.concatenate %38, %39 in 1 : vector<16x128xbf16>, vector<16x128xbf16> -> vector<16x256xbf16>
    %41 = arith.extf %40 : vector<16x256xbf16> to vector<16x256xf32>
    %c0_32 = arith.constant 0 : index
    %c0_33 = arith.constant 0 : index
    %42 = vector.load %arg10[%c0_32, %c0_33] : memref<16x256xf32, #tpu.memory_space<vmem>>, vector<16x256xf32>
    %43 = arith.truncf %42 : vector<16x256xf32> to vector<16x256xbf16>
    %c0_34 = arith.constant 0 : index
    %c0_35 = arith.constant 0 : index
    %44 = vector.load %arg5[%c0_34, %c0_35] : memref<256x256xbf16, #tpu.memory_space<vmem>>, vector<256x256xbf16>
    %cst_36 = arith.constant dense<0.000000e+00> : vector<16x256xf32>
    %45 = tpu.matmul %43, %44, %cst_36 {dimension_numbers = #tpu.dot_dimension_numbers<[1], [0], [0], [1], [0, 0, 1, 1], [], []>} : vector<16x256xbf16>, vector<256x256xbf16>, vector<16x256xf32> -> vector<16x256xf32>
    %46 = arith.addf %41, %45 : vector<16x256xf32>
    %47 = math.tanh %46 : vector<16x256xf32>
    %c0_37 = arith.constant 0 : index
    %c0_38 = arith.constant 0 : index
    %48 = vector.load %arg10[%c0_37, %c0_38] : memref<16x256xf32, #tpu.memory_space<vmem>>, vector<16x256xf32>
    tpu.vector_store %arg10[%c0_37, %c0_38], %47 {strides = array<i32>} : memref<16x256xf32, #tpu.memory_space<vmem>>, vector<16x256xf32>,
    %49 = vector.extract_strided_slice %47 {offsets = [0, 0], sizes = [16, 128], strides = [1, 1]} : vector<16x256xf32> to vector<16x128xf32>
    %50 = arith.truncf %49 : vector<16x128xf32> to vector<16x128xbf16>
    %c16_39 = arith.constant 16 : index
    %c0_40 = arith.constant 0 : index
    %51 = vector.load %arg8[%c16_39, %c0_40] : memref<128x128xbf16, #tpu.memory_space<vmem>>, vector<16x128xbf16>
    tpu.vector_store %arg8[%c16_39, %c0_40], %50 {strides = array<i32>} : memref<128x128xbf16, #tpu.memory_space<vmem>>, vector<16x128xbf16>,
    %52 = vector.extract_strided_slice %47 {offsets = [0, 128], sizes = [16, 128], strides = [1, 1]} : vector<16x256xf32> to vector<16x128xf32>
    %53 = arith.truncf %52 : vector<16x128xf32> to vector<16x128xbf16>
    %c96_41 = arith.constant 96 : index
    %c0_42 = arith.constant 0 : index
    %54 = vector.load %arg9[%c96_41, %c0_42] : memref<128x128xbf16, #tpu.memory_space<vmem>>, vector<16x128xbf16>
    tpu.vector_store %arg9[%c96_41, %c0_42], %53 {strides = array<i32>} : memref<128x128xbf16, #tpu.memory_space<vmem>>, vector<16x128xbf16>,
    %c32 = arith.constant 32 : index
    %c0_43 = arith.constant 0 : index
    %55 = vector.load %arg11[%c32, %c0_43] : memref<128x256xbf16, #tpu.memory_space<vmem>>, vector<16x128xbf16>
    %c80 = arith.constant 80 : index
    %c128_44 = arith.constant 128 : index
    %56 = vector.load %arg11[%c80, %c128_44] : memref<128x256xbf16, #tpu.memory_space<vmem>>, vector<16x128xbf16>
    %57 = tpu.concatenate %55, %56 in 1 : vector<16x128xbf16>, vector<16x128xbf16> -> vector<16x256xbf16>
    %58 = arith.extf %57 : vector<16x256xbf16> to vector<16x256xf32>
    %c0_45 = arith.constant 0 : index
    %c0_46 = arith.constant 0 : index
    %59 = vector.load %arg10[%c0_45, %c0_46] : memref<16x256xf32, #tpu.memory_space<vmem>>, vector<16x256xf32>
    %60 = arith.truncf %59 : vector<16x256xf32> to vector<16x256xbf16>
    %c0_47 = arith.constant 0 : index
    %c0_48 = arith.constant 0 : index
    %61 = vector.load %arg5[%c0_47, %c0_48] : memref<256x256xbf16, #tpu.memory_space<vmem>>, vector<256x256xbf16>
    %cst_49 = arith.constant dense<0.000000e+00> : vector<16x256xf32>
    %62 = tpu.matmul %60, %61, %cst_49 {dimension_numbers = #tpu.dot_dimension_numbers<[1], [0], [0], [1], [0, 0, 1, 1], [], []>} : vector<16x256xbf16>, vector<256x256xbf16>, vector<16x256xf32> -> vector<16x256xf32>
    %63 = arith.addf %58, %62 : vector<16x256xf32>
    %64 = math.tanh %63 : vector<16x256xf32>
    %c0_50 = arith.constant 0 : index
    %c0_51 = arith.constant 0 : index
    %65 = vector.load %arg10[%c0_50, %c0_51] : memref<16x256xf32, #tpu.memory_space<vmem>>, vector<16x256xf32>
    tpu.vector_store %arg10[%c0_50, %c0_51], %64 {strides = array<i32>} : memref<16x256xf32, #tpu.memory_space<vmem>>, vector<16x256xf32>,
    %66 = vector.extract_strided_slice %64 {offsets = [0, 0], sizes = [16, 128], strides = [1, 1]} : vector<16x256xf32> to vector<16x128xf32>
    %67 = arith.truncf %66 : vector<16x128xf32> to vector<16x128xbf16>
    %c32_52 = arith.constant 32 : index
    %c0_53 = arith.constant 0 : index
    %68 = vector.load %arg8[%c32_52, %c0_53] : memref<128x128xbf16, #tpu.memory_space<vmem>>, vector<16x128xbf16>
    tpu.vector_store %arg8[%c32_52, %c0_53], %67 {strides = array<i32>} : memref<128x128xbf16, #tpu.memory_space<vmem>>, vector<16x128xbf16>,
    %69 = vector.extract_strided_slice %64 {offsets = [0, 128], sizes = [16, 128], strides = [1, 1]} : vector<16x256xf32> to vector<16x128xf32>
    %70 = arith.truncf %69 : vector<16x128xf32> to vector<16x128xbf16>
    %c80_54 = arith.constant 80 : index
    %c0_55 = arith.constant 0 : index
    %71 = vector.load %arg9[%c80_54, %c0_55] : memref<128x128xbf16, #tpu.memory_space<vmem>>, vector<16x128xbf16>
    tpu.vector_store %arg9[%c80_54, %c0_55], %70 {strides = array<i32>} : memref<128x128xbf16, #tpu.memory_space<vmem>>, vector<16x128xbf16>,
    %c48 = arith.constant 48 : index
    %c0_56 = arith.constant 0 : index
    %72 = vector.load %arg11[%c48, %c0_56] : memref<128x256xbf16, #tpu.memory_space<vmem>>, vector<16x128xbf16>
    %c64 = arith.constant 64 : index
    %c128_57 = arith.constant 128 : index
    %73 = vector.load %arg11[%c64, %c128_57] : memref<128x256xbf16, #tpu.memory_space<vmem>>, vector<16x128xbf16>
    %74 = tpu.concatenate %72, %73 in 1 : vector<16x128xbf16>, vector<16x128xbf16> -> vector<16x256xbf16>
    %75 = arith.extf %74 : vector<16x256xbf16> to vector<16x256xf32>
    %c0_58 = arith.constant 0 : index
    %c0_59 = arith.constant 0 : index
    %76 = vector.load %arg10[%c0_58, %c0_59] : memref<16x256xf32, #tpu.memory_space<vmem>>, vector<16x256xf32>
    %77 = arith.truncf %76 : vector<16x256xf32> to vector<16x256xbf16>
    %c0_60 = arith.constant 0 : index
    %c0_61 = arith.constant 0 : index
    %78 = vector.load %arg5[%c0_60, %c0_61] : memref<256x256xbf16, #tpu.memory_space<vmem>>, vector<256x256xbf16>
    %cst_62 = arith.constant dense<0.000000e+00> : vector<16x256xf32>
    %79 = tpu.matmul %77, %78, %cst_62 {dimension_numbers = #tpu.dot_dimension_numbers<[1], [0], [0], [1], [0, 0, 1, 1], [], []>} : vector<16x256xbf16>, vector<256x256xbf16>, vector<16x256xf32> -> vector<16x256xf32>
    %80 = arith.addf %75, %79 : vector<16x256xf32>
    %81 = math.tanh %80 : vector<16x256xf32>
    %c0_63 = arith.constant 0 : index
    %c0_64 = arith.constant 0 : index
    %82 = vector.load %arg10[%c0_63, %c0_64] : memref<16x256xf32, #tpu.memory_space<vmem>>, vector<16x256xf32>
    tpu.vector_store %arg10[%c0_63, %c0_64], %81 {strides = array<i32>} : memref<16x256xf32, #tpu.memory_space<vmem>>, vector<16x256xf32>,
    %83 = vector.extract_strided_slice %81 {offsets = [0, 0], sizes = [16, 128], strides = [1, 1]} : vector<16x256xf32> to vector<16x128xf32>
    %84 = arith.truncf %83 : vector<16x128xf32> to vector<16x128xbf16>
    %c48_65 = arith.constant 48 : index
    %c0_66 = arith.constant 0 : index
    %85 = vector.load %arg8[%c48_65, %c0_66] : memref<128x128xbf16, #tpu.memory_space<vmem>>, vector<16x128xbf16>
    tpu.vector_store %arg8[%c48_65, %c0_66], %84 {strides = array<i32>} : memref<128x128xbf16, #tpu.memory_space<vmem>>, vector<16x128xbf16>,
    %86 = vector.extract_strided_slice %81 {offsets = [0, 128], sizes = [16, 128], strides = [1, 1]} : vector<16x256xf32> to vector<16x128xf32>
    %87 = arith.truncf %86 : vector<16x128xf32> to vector<16x128xbf16>
    %c64_67 = arith.constant 64 : index
    %c0_68 = arith.constant 0 : index
    %88 = vector.load %arg9[%c64_67, %c0_68] : memref<128x128xbf16, #tpu.memory_space<vmem>>, vector<16x128xbf16>
    tpu.vector_store %arg9[%c64_67, %c0_68], %87 {strides = array<i32>} : memref<128x128xbf16, #tpu.memory_space<vmem>>, vector<16x128xbf16>,
    %c64_69 = arith.constant 64 : index
    %c0_70 = arith.constant 0 : index
    %89 = vector.load %arg11[%c64_69, %c0_70] : memref<128x256xbf16, #tpu.memory_space<vmem>>, vector<16x128xbf16>
    %c48_71 = arith.constant 48 : index
    %c128_72 = arith.constant 128 : index
    %90 = vector.load %arg11[%c48_71, %c128_72] : memref<128x256xbf16, #tpu.memory_space<vmem>>, vector<16x128xbf16>
    %91 = tpu.concatenate %89, %90 in 1 : vector<16x128xbf16>, vector<16x128xbf16> -> vector<16x256xbf16>
    %92 = arith.extf %91 : vector<16x256xbf16> to vector<16x256xf32>
    %c0_73 = arith.constant 0 : index
    %c0_74 = arith.constant 0 : index
    %93 = vector.load %arg10[%c0_73, %c0_74] : memref<16x256xf32, #tpu.memory_space<vmem>>, vector<16x256xf32>
    %94 = arith.truncf %93 : vector<16x256xf32> to vector<16x256xbf16>
    %c0_75 = arith.constant 0 : index
    %c0_76 = arith.constant 0 : index
    %95 = vector.load %arg5[%c0_75, %c0_76] : memref<256x256xbf16, #tpu.memory_space<vmem>>, vector<256x256xbf16>
    %cst_77 = arith.constant dense<0.000000e+00> : vector<16x256xf32>
    %96 = tpu.matmul %94, %95, %cst_77 {dimension_numbers = #tpu.dot_dimension_numbers<[1], [0], [0], [1], [0, 0, 1, 1], [], []>} : vector<16x256xbf16>, vector<256x256xbf16>, vector<16x256xf32> -> vector<16x256xf32>
    %97 = arith.addf %92, %96 : vector<16x256xf32>
    %98 = math.tanh %97 : vector<16x256xf32>
    %c0_78 = arith.constant 0 : index
    %c0_79 = arith.constant 0 : index
    %99 = vector.load %arg10[%c0_78, %c0_79] : memref<16x256xf32, #tpu.memory_space<vmem>>, vector<16x256xf32>
    tpu.vector_store %arg10[%c0_78, %c0_79], %98 {strides = array<i32>} : memref<16x256xf32, #tpu.memory_space<vmem>>, vector<16x256xf32>,
    %100 = vector.extract_strided_slice %98 {offsets = [0, 0], sizes = [16, 128], strides = [1, 1]} : vector<16x256xf32> to vector<16x128xf32>
    %101 = arith.truncf %100 : vector<16x128xf32> to vector<16x128xbf16>
    %c64_80 = arith.constant 64 : index
    %c0_81 = arith.constant 0 : index
    %102 = vector.load %arg8[%c64_80, %c0_81] : memref<128x128xbf16, #tpu.memory_space<vmem>>, vector<16x128xbf16>
    tpu.vector_store %arg8[%c64_80, %c0_81], %101 {strides = array<i32>} : memref<128x128xbf16, #tpu.memory_space<vmem>>, vector<16x128xbf16>,
    %103 = vector.extract_strided_slice %98 {offsets = [0, 128], sizes = [16, 128], strides = [1, 1]} : vector<16x256xf32> to vector<16x128xf32>
    %104 = arith.truncf %103 : vector<16x128xf32> to vector<16x128xbf16>
    %c48_82 = arith.constant 48 : index
    %c0_83 = arith.constant 0 : index
    %105 = vector.load %arg9[%c48_82, %c0_83] : memref<128x128xbf16, #tpu.memory_space<vmem>>, vector<16x128xbf16>
    tpu.vector_store %arg9[%c48_82, %c0_83], %104 {strides = array<i32>} : memref<128x128xbf16, #tpu.memory_space<vmem>>, vector<16x128xbf16>,
    %c80_84 = arith.constant 80 : index
    %c0_85 = arith.constant 0 : index
    %106 = vector.load %arg11[%c80_84, %c0_85] : memref<128x256xbf16, #tpu.memory_space<vmem>>, vector<16x128xbf16>
    %c32_86 = arith.constant 32 : index
    %c128_87 = arith.constant 128 : index
    %107 = vector.load %arg11[%c32_86, %c128_87] : memref<128x256xbf16, #tpu.memory_space<vmem>>, vector<16x128xbf16>
    %108 = tpu.concatenate %106, %107 in 1 : vector<16x128xbf16>, vector<16x128xbf16> -> vector<16x256xbf16>
    %109 = arith.extf %108 : vector<16x256xbf16> to vector<16x256xf32>
    %c0_88 = arith.constant 0 : index
    %c0_89 = arith.constant 0 : index
    %110 = vector.load %arg10[%c0_88, %c0_89] : memref<16x256xf32, #tpu.memory_space<vmem>>, vector<16x256xf32>
    %111 = arith.truncf %110 : vector<16x256xf32> to vector<16x256xbf16>
    %c0_90 = arith.constant 0 : index
    %c0_91 = arith.constant 0 : index
    %112 = vector.load %arg5[%c0_90, %c0_91] : memref<256x256xbf16, #tpu.memory_space<vmem>>, vector<256x256xbf16>
    %cst_92 = arith.constant dense<0.000000e+00> : vector<16x256xf32>
    %113 = tpu.matmul %111, %112, %cst_92 {dimension_numbers = #tpu.dot_dimension_numbers<[1], [0], [0], [1], [0, 0, 1, 1], [], []>} : vector<16x256xbf16>, vector<256x256xbf16>, vector<16x256xf32> -> vector<16x256xf32>
    %114 = arith.addf %109, %113 : vector<16x256xf32>
    %115 = math.tanh %114 : vector<16x256xf32>
    %c0_93 = arith.constant 0 : index
    %c0_94 = arith.constant 0 : index
    %116 = vector.load %arg10[%c0_93, %c0_94] : memref<16x256xf32, #tpu.memory_space<vmem>>, vector<16x256xf32>
    tpu.vector_store %arg10[%c0_93, %c0_94], %115 {strides = array<i32>} : memref<16x256xf32, #tpu.memory_space<vmem>>, vector<16x256xf32>,
    %117 = vector.extract_strided_slice %115 {offsets = [0, 0], sizes = [16, 128], strides = [1, 1]} : vector<16x256xf32> to vector<16x128xf32>
    %118 = arith.truncf %117 : vector<16x128xf32> to vector<16x128xbf16>
    %c80_95 = arith.constant 80 : index
    %c0_96 = arith.constant 0 : index
    %119 = vector.load %arg8[%c80_95, %c0_96] : memref<128x128xbf16, #tpu.memory_space<vmem>>, vector<16x128xbf16>
    tpu.vector_store %arg8[%c80_95, %c0_96], %118 {strides = array<i32>} : memref<128x128xbf16, #tpu.memory_space<vmem>>, vector<16x128xbf16>,
    %120 = vector.extract_strided_slice %115 {offsets = [0, 128], sizes = [16, 128], strides = [1, 1]} : vector<16x256xf32> to vector<16x128xf32>
    %121 = arith.truncf %120 : vector<16x128xf32> to vector<16x128xbf16>
    %c32_97 = arith.constant 32 : index
    %c0_98 = arith.constant 0 : index
    %122 = vector.load %arg9[%c32_97, %c0_98] : memref<128x128xbf16, #tpu.memory_space<vmem>>, vector<16x128xbf16>
    tpu.vector_store %arg9[%c32_97, %c0_98], %121 {strides = array<i32>} : memref<128x128xbf16, #tpu.memory_space<vmem>>, vector<16x128xbf16>,
    %c96_99 = arith.constant 96 : index
    %c0_100 = arith.constant 0 : index
    %123 = vector.load %arg11[%c96_99, %c0_100] : memref<128x256xbf16, #tpu.memory_space<vmem>>, vector<16x128xbf16>
    %c16_101 = arith.constant 16 : index
    %c128_102 = arith.constant 128 : index
    %124 = vector.load %arg11[%c16_101, %c128_102] : memref<128x256xbf16, #tpu.memory_space<vmem>>, vector<16x128xbf16>
    %125 = tpu.concatenate %123, %124 in 1 : vector<16x128xbf16>, vector<16x128xbf16> -> vector<16x256xbf16>
    %126 = arith.extf %125 : vector<16x256xbf16> to vector<16x256xf32>
    %c0_103 = arith.constant 0 : index
    %c0_104 = arith.constant 0 : index
    %127 = vector.load %arg10[%c0_103, %c0_104] : memref<16x256xf32, #tpu.memory_space<vmem>>, vector<16x256xf32>
    %128 = arith.truncf %127 : vector<16x256xf32> to vector<16x256xbf16>
    %c0_105 = arith.constant 0 : index
    %c0_106 = arith.constant 0 : index
    %129 = vector.load %arg5[%c0_105, %c0_106] : memref<256x256xbf16, #tpu.memory_space<vmem>>, vector<256x256xbf16>
    %cst_107 = arith.constant dense<0.000000e+00> : vector<16x256xf32>
    %130 = tpu.matmul %128, %129, %cst_107 {dimension_numbers = #tpu.dot_dimension_numbers<[1], [0], [0], [1], [0, 0, 1, 1], [], []>} : vector<16x256xbf16>, vector<256x256xbf16>, vector<16x256xf32> -> vector<16x256xf32>
    %131 = arith.addf %126, %130 : vector<16x256xf32>
    %132 = math.tanh %131 : vector<16x256xf32>
    %c0_108 = arith.constant 0 : index
    %c0_109 = arith.constant 0 : index
    %133 = vector.load %arg10[%c0_108, %c0_109] : memref<16x256xf32, #tpu.memory_space<vmem>>, vector<16x256xf32>
    tpu.vector_store %arg10[%c0_108, %c0_109], %132 {strides = array<i32>} : memref<16x256xf32, #tpu.memory_space<vmem>>, vector<16x256xf32>,
    %134 = vector.extract_strided_slice %132 {offsets = [0, 0], sizes = [16, 128], strides = [1, 1]} : vector<16x256xf32> to vector<16x128xf32>
    %135 = arith.truncf %134 : vector<16x128xf32> to vector<16x128xbf16>
    %c96_110 = arith.constant 96 : index
    %c0_111 = arith.constant 0 : index
    %136 = vector.load %arg8[%c96_110, %c0_111] : memref<128x128xbf16, #tpu.memory_space<vmem>>, vector<16x128xbf16>
    tpu.vector_store %arg8[%c96_110, %c0_111], %135 {strides = array<i32>} : memref<128x128xbf16, #tpu.memory_space<vmem>>, vector<16x128xbf16>,
    %137 = vector.extract_strided_slice %132 {offsets = [0, 128], sizes = [16, 128], strides = [1, 1]} : vector<16x256xf32> to vector<16x128xf32>
    %138 = arith.truncf %137 : vector<16x128xf32> to vector<16x128xbf16>
    %c16_112 = arith.constant 16 : index
    %c0_113 = arith.constant 0 : index
    %139 = vector.load %arg9[%c16_112, %c0_113] : memref<128x128xbf16, #tpu.memory_space<vmem>>, vector<16x128xbf16>
    tpu.vector_store %arg9[%c16_112, %c0_113], %138 {strides = array<i32>} : memref<128x128xbf16, #tpu.memory_space<vmem>>, vector<16x128xbf16>,
    %c112_114 = arith.constant 112 : index
    %c0_115 = arith.constant 0 : index
    %140 = vector.load %arg11[%c112_114, %c0_115] : memref<128x256xbf16, #tpu.memory_space<vmem>>, vector<16x128xbf16>
    %c0_116 = arith.constant 0 : index
    %c128_117 = arith.constant 128 : index
    %141 = vector.load %arg11[%c0_116, %c128_117] : memref<128x256xbf16, #tpu.memory_space<vmem>>, vector<16x128xbf16>
    %142 = tpu.concatenate %140, %141 in 1 : vector<16x128xbf16>, vector<16x128xbf16> -> vector<16x256xbf16>
    %143 = arith.extf %142 : vector<16x256xbf16> to vector<16x256xf32>
    %c0_118 = arith.constant 0 : index
    %c0_119 = arith.constant 0 : index
    %144 = vector.load %arg10[%c0_118, %c0_119] : memref<16x256xf32, #tpu.memory_space<vmem>>, vector<16x256xf32>
    %145 = arith.truncf %144 : vector<16x256xf32> to vector<16x256xbf16>
    %c0_120 = arith.constant 0 : index
    %c0_121 = arith.constant 0 : index
    %146 = vector.load %arg5[%c0_120, %c0_121] : memref<256x256xbf16, #tpu.memory_space<vmem>>, vector<256x256xbf16>
    %cst_122 = arith.constant dense<0.000000e+00> : vector<16x256xf32>
    %147 = tpu.matmul %145, %146, %cst_122 {dimension_numbers = #tpu.dot_dimension_numbers<[1], [0], [0], [1], [0, 0, 1, 1], [], []>} : vector<16x256xbf16>, vector<256x256xbf16>, vector<16x256xf32> -> vector<16x256xf32>
    %148 = arith.addf %143, %147 : vector<16x256xf32>
    %149 = math.tanh %148 : vector<16x256xf32>
    %c0_123 = arith.constant 0 : index
    %c0_124 = arith.constant 0 : index
    %150 = vector.load %arg10[%c0_123, %c0_124] : memref<16x256xf32, #tpu.memory_space<vmem>>, vector<16x256xf32>
    tpu.vector_store %arg10[%c0_123, %c0_124], %149 {strides = array<i32>} : memref<16x256xf32, #tpu.memory_space<vmem>>, vector<16x256xf32>,
    %151 = vector.extract_strided_slice %149 {offsets = [0, 0], sizes = [16, 128], strides = [1, 1]} : vector<16x256xf32> to vector<16x128xf32>
    %152 = arith.truncf %151 : vector<16x128xf32> to vector<16x128xbf16>
    %c112_125 = arith.constant 112 : index
    %c0_126 = arith.constant 0 : index
    %153 = vector.load %arg8[%c112_125, %c0_126] : memref<128x128xbf16, #tpu.memory_space<vmem>>, vector<16x128xbf16>
    tpu.vector_store %arg8[%c112_125, %c0_126], %152 {strides = array<i32>} : memref<128x128xbf16, #tpu.memory_space<vmem>>, vector<16x128xbf16>,
    %154 = vector.extract_strided_slice %149 {offsets = [0, 128], sizes = [16, 128], strides = [1, 1]} : vector<16x256xf32> to vector<16x128xf32>
    %155 = arith.truncf %154 : vector<16x128xf32> to vector<16x128xbf16>
    %c0_127 = arith.constant 0 : index
    %c0_128 = arith.constant 0 : index
    %156 = vector.load %arg9[%c0_127, %c0_128] : memref<128x128xbf16, #tpu.memory_space<vmem>>, vector<16x128xbf16>
    tpu.vector_store %arg9[%c0_127, %c0_128], %155 {strides = array<i32>} : memref<128x128xbf16, #tpu.memory_space<vmem>>, vector<16x128xbf16>,
    return
  }
  func.func @transform_0(%arg0: i32) -> (i32, i32) {
    %c0_i32 = arith.constant 0 : i32
    %c0_i32_0 = arith.constant 0 : i32
    return %arg0, %c0_i32 : i32, i32
  }
  func.func @transform_1(%arg0: i32) -> (i32, i32) {
    %c0_i32 = arith.constant 0 : i32
    %0 = arith.subi %c0_i32, %arg0 : i32
    %c0_i32_0 = arith.constant 0 : i32
    %c0_i32_1 = arith.constant 0 : i32
    return %0, %c0_i32_0 : i32, i32
  }
  func.func @transform_2(%arg0: i32) -> (i32, i32) {
    %c0_i32 = arith.constant 0 : i32
    %c0_i32_0 = arith.constant 0 : i32
    %c0_i32_1 = arith.constant 0 : i32
    return %c0_i32, %c0_i32_0 : i32, i32
  }
  func.func @transform_3(%arg0: i32) -> (i32, i32) {
    %c0_i32 = arith.constant 0 : i32
    %c0_i32_0 = arith.constant 0 : i32
    %c0_i32_1 = arith.constant 0 : i32
    return %c0_i32, %c0_i32_0 : i32, i32
  }
  func.func @transform_4(%arg0: i32) -> (i32, i32) {
    %c0_i32 = arith.constant 0 : i32
    %c0_i32_0 = arith.constant 0 : i32
    %c0_i32_1 = arith.constant 0 : i32
    return %c0_i32, %c0_i32_0 : i32, i32
  }
  func.func @transform_5(%arg0: i32) -> (i32, i32) {
    %c0_i32 = arith.constant 0 : i32
    %c0_i32_0 = arith.constant 0 : i32
    %c0_i32_1 = arith.constant 0 : i32
    return %c0_i32, %c0_i32_0 : i32, i32
  }
  func.func @transform_6(%arg0: i32) -> (i32, i32) {
    %c0_i32 = arith.constant 0 : i32
    %c0_i32_0 = arith.constant 0 : i32
    %c0_i32_1 = arith.constant 0 : i32
    return %c0_i32, %c0_i32_0 : i32, i32
  }
  func.func @transform_7(%arg0: i32) -> (i32, i32) {
    %c0_i32 = arith.constant 0 : i32
    %c0_i32_0 = arith.constant 0 : i32
    return %arg0, %c0_i32 : i32, i32
  }
  func.func @transform_8(%arg0: i32) -> (i32, i32) {
    %c0_i32 = arith.constant 0 : i32
    %0 = arith.subi %c0_i32, %arg0 : i32
    %c0_i32_0 = arith.constant 0 : i32
    %c0_i32_1 = arith.constant 0 : i32
    return %0, %c0_i32_0 : i32, i32
  }
}

</mosaic_0001>

<bundles_post_ra>
// kernel: tpu_custom_call.1
= control target key start
LH: loop header
LB: loop body
LE: loop exit
PB: predicated region body
PF: predicated region fallthrough
CT: control target
= control target key end

     0   :  { %14 = vsyncpa [#allocation5], 0  ;;  %vm120_vm0 = vcmask 1041408   ;;  %vm95_vm1 = vcmask 31744   ;;  %s4267_s0 = inlined_call_operand.vmem [shape: f32[128,4], index: 0, kind: input, shape index: {}]   ;;  %s4268_s1 = inlined_call_operand.vmem [shape: f32[128,4], index: 1, kind: input, shape index: {}]   ;;  %s4269_s2 = inlined_call_operand.vmem [shape: bf16[4,128], index: 2, kind: input, shape index: {}]   ;;  %s4270_s3 = inlined_call_operand.vmem [shape: bf16[4,128], index: 3, kind: input, shape index: {}]   ;;  %s4271_s4 = inlined_call_operand.vmem [shape: bf16[256,256], index: 4, kind: input, shape index: {}]   ;;  %s4272_s5 = inlined_call_operand.vmem [shape: f32[1,128], index: 5, kind: input, shape index: {}]   ;;  %s4273_s6 = inlined_call_operand.vmem [shape: f32[1,128], index: 6, kind: input, shape index: {}]   ;;  %s4274_s7 = inlined_call_operand.hbm [shape: bf16[128,128], index: 7, kind: output, shape index: {0}]   ;;  %s4275_s8 = inlined_call_operand.hbm [shape: bf16[128,128], index: 8, kind: output, shape index: {1}]  }
   0x1   :  { %v87_v0 = vld [vmem:[%s4269_s2] sm:$0x3]  ;;  %v64_v2 = vld [vmem:[%s4267_s0 + $0x8] sm:$0xff]  ;;  %v65_v5 = vld [vmem:[%s4267_s0 + $0x10] sm:$0xff] }
   0x2   :  { %v63_v1 = vld [vmem:[%s4267_s0] sm:$0xff]  ;;  %3171 = vmatprep.subr.msk.bf16.mxu0 %vm120_vm0, %v87_v0  ;;  %v122_v3 = vsel %vm120_vm0, %v87_v0, 0  ;;  %v66_v6 = vld [vmem:[%s4267_s0 + $0x18] sm:$0xff]  ;;  %v238_v18 = vld [vmem:[%s4268_s1 + $0x8] sm:$0xff] }
   0x3   :  { %v79_v4 = vpack.c.bf16 %v64_v2, %v63_v1  ;;  %3136 = vmatpush3.bf16.msra.mxu0 %v122_v3  ;;  %v80_v7 = vpack.c.bf16 %v66_v6, %v65_v5  ;;  %v3456_v8 = vld [vmem:[%s4271_s4] ss:$8 sps:$4 sm:$0xff]   ;;  %v3461_v9 = vld [vmem:[%s4271_s4 + $0x4] ss:$8 sps:$4 sm:$0xff]   ;;  %v3468_v10 = vld [vmem:[%s4271_s4 + $0x14] ss:$8 sps:$4 sm:$0xff]  }
   0x4   :  { %613 = vmatprep.subr.bf16.mxu0 %v3461_v9  ;;  %v3475_v11 = vld [vmem:[%s4271_s4 + $0x10] ss:$8 sps:$4 sm:$0xff]   ;;  %v3481_v12 = vld [vmem:[%s4271_s4 + $0x24] ss:$8 sps:$4 sm:$0xff]   ;;  %v3487_v13 = vld [vmem:[%s4271_s4 + $0x20] ss:$8 sps:$4 sm:$0xff]  }
   0x5   :  { %3137 = vmatprep.mubr.msk.bf16.mxu0 %vm95_vm1, %v79_v4  ;;  %v3492_v14 = vld [vmem:[%s4271_s4 + $0x34] ss:$8 sps:$4 sm:$0xff]   ;;  %v261_v15 = vld [vmem:[%s4270_s3] sm:$0x3]  ;;  %v3516_v21 = vld [vmem:[%s4271_s4 + $0x30] ss:$8 sps:$4 sm:$0xff]  }
   0x6   :  { %3138 = vmatmul.mubr.msk.bf16.vlgmr.msra.gmra.mrb[0].mxu0 %vm95_vm1, %v80_v7  ;;  %3172 = vmatprep.subr.msk.bf16.mxu1 %vm120_vm0, %v261_v15  ;;  %v294_v16 = vsel %vm120_vm0, %v261_v15, 0  ;;  %v237_v17 = vld [vmem:[%s4268_s1] sm:$0xff]  ;;  %v239_v19 = vld [vmem:[%s4268_s1 + $0x10] sm:$0xff]  ;;  %v240_v20 = vld [vmem:[%s4268_s1 + $0x18] sm:$0xff] }
   0x7   :  { %614 = vmatpush1.bf16.msra.mxu0 %v3456_v8  ;;  %3154 = vmatpush3.bf16.msra.mxu1 %v294_v16  ;;  %v253_v22 = vpack.c.bf16 %v238_v18, %v237_v17  ;;  %v254_v23 = vpack.c.bf16 %v240_v20, %v239_v19  ;;  %v3523_v24 = vld [vmem:[%s4271_s4 + $0x44] ss:$8 sps:$4 sm:$0xff]   ;;  %v3534_v27 = vld [vmem:[%s4271_s4 + $0x40] ss:$8 sps:$4 sm:$0xff]   ;;  %v3540_v29 = vld [vmem:[%s4271_s4 + $0x54] ss:$8 sps:$4 sm:$0xff]  }
   0x8   :  { %615 = vmatprep.subr.bf16.mxu0 %v3468_v10  ;;  %892 = vmatprep.subr.bf16.mxu1 %v3461_v9  ;;  %v67_v25 = vld [vmem:[%s4267_s0 + $0x20] sm:$0xff]  ;;  %v68_v26 = vld [vmem:[%s4267_s0 + $0x28] sm:$0xff]  ;;  %v69_v30 = vld [vmem:[%s4267_s0 + $0x30] sm:$0xff]  ;;  %v3386_v16 = vmov 0.0|0.0  }
   0x9   :  { %3155 = vmatprep.mubr.msk.bf16.mxu1 %vm95_vm1, %v253_v22  ;;  %v81_v28 = vpack.c.bf16 %v68_v26, %v67_v25  ;;  %v70_v31 = vld [vmem:[%s4267_s0 + $0x38] sm:$0xff]  ;;  %v241_v33 = vld [vmem:[%s4268_s1 + $0x20] sm:$0xff]  ;;  %v242_v34 = vld [vmem:[%s4268_s1 + $0x28] sm:$0xff] }
   0xa   :  { %3156 = vmatmul.mubr.msk.bf16.vlgmr.msra.gmra.mrb[0].mxu1 %vm95_vm1, %v254_v23  ;;  %v82_v32 = vpack.c.bf16 %v70_v31, %v69_v30  ;;  %v243_v35 = vld [vmem:[%s4268_s1 + $0x30] sm:$0xff]  ;;  %v255_v36 = vpack.c.bf16 %v242_v34, %v241_v33  ;;  %v244_v37 = vld [vmem:[%s4268_s1 + $0x38] sm:$0xff]  ;;  %v71_v38 = vld [vmem:[%s4267_s0 + $0x40] sm:$0xff] }
   0xb   :  { %616 = vmatpush1.bf16.msra.mxu0 %v3475_v11  ;;  %3141 = vmatprep.mubr.msk.bf16.mxu0 %vm95_vm1, %v81_v28  ;;  %v256_v39 = vpack.c.bf16 %v244_v37, %v243_v35  ;;  %v72_v40 = vld [vmem:[%s4267_s0 + $0x48] sm:$0xff]  ;;  %v3578_v41 = vld [vmem:[%s4271_s4 + $0x50] ss:$8 sps:$4 sm:$0xff]   ;;  %v245_v46 = vld [vmem:[%s4268_s1 + $0x40] sm:$0xff] }
   0xc   :  { %617 = vmatprep.subr.bf16.mxu0 %v3481_v12  ;;  %893 = vmatpush1.bf16.msra.mxu1 %v3456_v8  ;;  %v3583_v42 = vld [vmem:[%s4271_s4 + $0x64] ss:$8 sps:$4 sm:$0xff]   ;;  %v83_v43 = vpack.c.bf16 %v72_v40, %v71_v38  ;;  %v73_v44 = vld [vmem:[%s4267_s0 + $0x50] sm:$0xff]  ;;  %v74_v45 = vld [vmem:[%s4267_s0 + $0x58] sm:$0xff] }
   0xd   :  { %894 = vmatprep.subr.bf16.mxu1 %v3468_v10  ;;  %3159 = vmatprep.mubr.msk.bf16.mxu1 %vm95_vm1, %v255_v36  ;;  %v246_v47 = vld [vmem:[%s4268_s1 + $0x48] sm:$0xff]  ;;  %v84_v49 = vpack.c.bf16 %v74_v45, %v73_v44  ;;  %v247_v51 = vld [vmem:[%s4268_s1 + $0x50] sm:$0xff]  ;;  %v248_v52 = vld [vmem:[%s4268_s1 + $0x58] sm:$0xff] }
   0xe   :  { %3142 = vmatmul.mubr.msk.bf16.gmra.mrb[4].mxu0 %vm95_vm1, %v82_v32  ;;  %v3602_v48 = vld [vmem:[%s4271_s4 + $0x60] ss:$8 sps:$4 sm:$0xff]   ;;  %v257_v50 = vpack.c.bf16 %v246_v47, %v245_v46  ;;  %v3625_v55 = vld [vmem:[%s4271_s4 + $0x74] ss:$8 sps:$4 sm:$0xff]   ;;  %v258_v58 = vpack.c.bf16 %v248_v52, %v247_v51  ;;  %v3647_v62 = vld [vmem:[%s4271_s4 + $0x70] ss:$8 sps:$4 sm:$0xff]  }
   0xf   :  { %618 = vmatpush1.bf16.msra.mxu0 %v3487_v13  ;;  %3145 = vmatprep.mubr.msk.bf16.mxu0 %vm95_vm1, %v83_v43  ;;  %v75_v53 = vld [vmem:[%s4267_s0 + $0x60] sm:$0xff]  ;;  %v76_v54 = vld [vmem:[%s4267_s0 + $0x68] sm:$0xff]  ;;  %v77_v59 = vld [vmem:[%s4267_s0 + $0x70] sm:$0xff] }
  0x10   :  { %619 = vmatprep.subr.bf16.mxu0 %v3492_v14  ;;  %895 = vmatpush1.bf16.msra.mxu1 %v3475_v11  ;;  %v85_v56 = vpack.c.bf16 %v76_v54, %v75_v53  ;;  %v249_v57 = vld [vmem:[%s4268_s1 + $0x60] sm:$0xff]  ;;  %v78_v60 = vld [vmem:[%s4267_s0 + $0x78] sm:$0xff]  ;;  %v250_v61 = vld [vmem:[%s4268_s1 + $0x68] sm:$0xff] }
  0x11   :  { %896 = vmatprep.subr.bf16.mxu1 %v3481_v12  ;;  %v259_v63 = vpack.c.bf16 %v250_v61, %v249_v57  ;;  %v3653_v0 = vld [vmem:[%s4271_s4 + $0x84] ss:$8 sps:$4 sm:$0xff]   ;;  %v3659_v1 = vld [vmem:[%s4271_s4 + $0x80] ss:$8 sps:$4 sm:$0xff]   ;;  %v86_v2 = vpack.c.bf16 %v78_v60, %v77_v59  ;;  %v251_v3 = vld [vmem:[%s4268_s1 + $0x70] sm:$0xff] }
  0x12   :  { %3160 = vmatmul.mubr.msk.bf16.gmra.mrb[4].mxu1 %vm95_vm1, %v256_v39  ;;  %v252_v4 = vld [vmem:[%s4268_s1 + $0x78] sm:$0xff]  ;;  %v3688_v7 = vld [vmem:[%s4271_s4 + $0xa4] ss:$8 sps:$4 sm:$0xff]   ;;  %v3696_v17 = vld [vmem:[%s4271_s4 + $0xa0] ss:$8 sps:$4 sm:$0xff]  }
  0x13   :  { %620 = vmatpush1.bf16.msra.mxu0 %v3516_v21  ;;  %3163 = vmatprep.mubr.msk.bf16.mxu1 %vm95_vm1, %v257_v50  ;;  %v3671_v5 = vld [vmem:[%s4271_s4 + $0x94] ss:$8 sps:$4 sm:$0xff]   ;;  %v3681_v6 = vld [vmem:[%s4271_s4 + $0x90] ss:$8 sps:$4 sm:$0xff]   ;;  %v260_v15 = vpack.c.bf16 %v252_v4, %v251_v3 }
  0x14   :  { %621 = vmatprep.subr.bf16.mxu0 %v3523_v24  ;;  %897 = vmatpush1.bf16.msra.mxu1 %v3487_v13  ;;  %v3705_v18 = vld [vmem:[%s4271_s4 + $0xb4] ss:$8 sps:$4 sm:$0xff]  }
  0x15   :  { %898 = vmatprep.subr.bf16.mxu1 %v3492_v14 }
  0x16   :  { %3146 = vmatmul.mubr.msk.bf16.gmra.mrb[8].mxu0 %vm95_vm1, %v84_v49 }
  0x17   :  { %622 = vmatpush1.bf16.msra.mxu0 %v3534_v27  ;;  %3149 = vmatprep.mubr.msk.bf16.mxu0 %vm95_vm1, %v85_v56 }
  0x18   :  { %623 = vmatprep.subr.bf16.mxu0 %v3540_v29  ;;  %899 = vmatpush1.bf16.msra.mxu1 %v3516_v21 }
  0x19   :  { %900 = vmatprep.subr.bf16.mxu1 %v3523_v24 }
  0x1a   :  { %3164 = vmatmul.mubr.msk.bf16.gmra.mrb[8].mxu1 %vm95_vm1, %v258_v58 }
  0x1b   :  { %624 = vmatpush1.bf16.msra.mxu0 %v3578_v41  ;;  %3167 = vmatprep.mubr.msk.bf16.mxu1 %vm95_vm1, %v259_v63 }
  0x1c   :  { %625 = vmatprep.subr.bf16.mxu0 %v3583_v42  ;;  %901 = vmatpush1.bf16.msra.mxu1 %v3534_v27 }
  0x1d   :  { %902 = vmatprep.subr.bf16.mxu1 %v3540_v29 }
  0x1e   :  { %3150 = vmatmul.mubr.msk.bf16.gmra.mrb[12].mxu0 %vm95_vm1, %v86_v2 }
  0x1f   :  { %626 = vmatpush1.bf16.msra.mxu0 %v3602_v48  ;;  %645 = vmatprep.mubr.bf16.mxu0 %v3386_v16 }
  0x20   :  { %627 = vmatprep.subr.bf16.mxu0 %v3625_v55  ;;  %903 = vmatpush1.bf16.msra.mxu1 %v3578_v41 }
  0x21   :  { %904 = vmatprep.subr.bf16.mxu1 %v3583_v42 }
  0x22   :  { %3168 = vmatmul.mubr.msk.bf16.gmra.mrb[12].mxu1 %vm95_vm1, %v260_v15 }
  0x23   :  { %628 = vmatpush1.bf16.msra.mxu0 %v3647_v62 }
  0x24   :  { %629 = vmatprep.subr.bf16.mxu0 %v3653_v0  ;;  %905 = vmatpush1.bf16.msra.mxu1 %v3602_v48 }
  0x27   :  { %630 = vmatpush1.bf16.msra.mxu0 %v3659_v1 }
  0x28   :  { %631 = vmatprep.subr.bf16.mxu0 %v3671_v5 }
  0x2b   :  { %632 = vmatpush1.bf16.msra.mxu0 %v3681_v6 }
  0x2c   :  { %633 = vmatprep.subr.bf16.mxu0 %v3688_v7 }
  0x2d   :  { %15 = vsyncpa [#allocation7], 0  ;;  %906 = vmatprep.subr.bf16.mxu1 %v3625_v55  ;;  %v3713_v19 = vld [vmem:[%s4271_s4 + $0xb0] ss:$8 sps:$4 sm:$0xff]   ;;  %v3719_v20 = vld [vmem:[%s4271_s4 + $0xc4] ss:$8 sps:$4 sm:$0xff]  }
  0x2e   :  { %907 = vmatpush1.bf16.msra.mxu1 %v3647_v62  ;;  %v3727_v22 = vld [vmem:[%s4271_s4 + $0xc0] ss:$8 sps:$4 sm:$0xff]   ;;  %v3733_v23 = vld [vmem:[%s4271_s4 + $0xd4] ss:$8 sps:$4 sm:$0xff]   ;;  %v3741_v25 = vld [vmem:[%s4271_s4 + $0xd0] ss:$8 sps:$4 sm:$0xff]  }
  0x2f   :  { %634 = vmatpush1.bf16.msra.mxu0 %v3696_v17  ;;  %908 = vmatprep.subr.bf16.mxu1 %v3653_v0  ;;  %v3747_v26 = vld [vmem:[%s4271_s4 + $0xe4] ss:$8 sps:$4 sm:$0xff]   ;;  %v3755_v28 = vld [vmem:[%s4271_s4 + $0xe0] ss:$8 sps:$4 sm:$0xff]   ;;  %v3761_v30 = vld [vmem:[%s4271_s4 + $0xf4] ss:$8 sps:$4 sm:$0xff]  }
  0x30   :  { %635 = vmatprep.subr.bf16.mxu0 %v3705_v18  ;;  %v3769_v31 = vld [vmem:[%s4271_s4 + $0xf0] ss:$8 sps:$4 sm:$0xff]   ;;  %v3831_v44 = vld [vmem:[%s4273_s6] ss:$0 sm:$0xff]  ;;  %s3388_s23 = smov [#allocation6]  }
  0x31   :  { %s2662_s24 = sshll.u32 %s3388_s23, 4  ;;  %s4236_s24 = int_to_ptr.vmem [resolvable:$true] %s2662_s24 }
  0x32   :  { %909 = vmatpush1.bf16.msra.mxu1 %v3659_v1 }
  0x33   :  { %636 = vmatpush1.bf16.msra.mxu0 %v3713_v19  ;;  %910 = vmatprep.subr.bf16.mxu1 %v3671_v5 }
  0x34   :  { %637 = vmatprep.subr.bf16.mxu0 %v3719_v20 }
  0x36   :  { %911 = vmatpush1.bf16.msra.mxu1 %v3681_v6 }
  0x37   :  { %638 = vmatpush1.bf16.msra.mxu0 %v3727_v22  ;;  %912 = vmatprep.subr.bf16.mxu1 %v3688_v7 }
  0x38   :  { %639 = vmatprep.subr.bf16.mxu0 %v3733_v23 }
  0x3a   :  { %913 = vmatpush1.bf16.msra.mxu1 %v3696_v17 }
  0x3b   :  { %640 = vmatpush1.bf16.msra.mxu0 %v3741_v25  ;;  %914 = vmatprep.subr.bf16.mxu1 %v3705_v18 }
  0x3c   :  { %641 = vmatprep.subr.bf16.mxu0 %v3747_v26 }
  0x3e   :  { %915 = vmatpush1.bf16.msra.mxu1 %v3713_v19 }
  0x3f   :  { %642 = vmatpush1.bf16.msra.mxu0 %v3755_v28  ;;  %916 = vmatprep.subr.bf16.mxu1 %v3719_v20 }
  0x40   :  { %643 = vmatprep.subr.bf16.mxu0 %v3761_v30 }
  0x42   :  { %917 = vmatpush1.bf16.msra.mxu1 %v3727_v22 }
  0x43   :  { %644 = vmatpush1.bf16.msra.mxu0 %v3769_v31  ;;  %918 = vmatprep.subr.bf16.mxu1 %v3733_v23 }
  0x44   :  { %1171 = vmatprep.subr.bf16.mxu0 %v3461_v9 }
  0x46   :  { %646 = vmatmul.mubr.bf16.vlgmr.msra.gmra.mrb[16].mxu0 %v3386_v16  ;;  %919 = vmatpush1.bf16.msra.mxu1 %v3741_v25 }
  0x47   :  { %1172 = vmatpush1.bf16.msra.mxu0 %v3456_v8  ;;  %920 = vmatprep.subr.bf16.mxu1 %v3747_v26 }
  0x48   :  { %1173 = vmatprep.subr.bf16.mxu0 %v3468_v10 }
  0x4a   :  { %921 = vmatpush1.bf16.msra.mxu1 %v3755_v28 }
  0x4b   :  { %1174 = vmatpush1.bf16.msra.mxu0 %v3475_v11  ;;  %922 = vmatprep.subr.bf16.mxu1 %v3761_v30 }
  0x4c   :  { %1175 = vmatprep.subr.bf16.mxu0 %v3481_v12 }
  0x4e   :  { %923 = vmatpush1.bf16.msra.mxu1 %v3769_v31 }
  0x4f   :  { %1176 = vmatpush1.bf16.msra.mxu0 %v3487_v13  ;;  %1450 = vmatprep.subr.bf16.mxu1 %v3461_v9  ;;  %v3818_v9 = vld [vmem:[%s4272_s5] ss:$0 sm:$0xff] }
  0x50   :  { %1177 = vmatprep.subr.bf16.mxu0 %v3492_v14 }
  0x53   :  { %1178 = vmatpush1.bf16.msra.mxu0 %v3516_v21 }
  0x54   :  { %1179 = vmatprep.subr.bf16.mxu0 %v3523_v24 }
  0x57   :  { %1180 = vmatpush1.bf16.msra.mxu0 %v3534_v27 }
  0x58   :  { %1181 = vmatprep.subr.bf16.mxu0 %v3540_v29 }
  0x5b   :  { %1182 = vmatpush1.bf16.msra.mxu0 %v3578_v41 }
  0x5c   :  { %1183 = vmatprep.subr.bf16.mxu0 %v3583_v42 }
  0x5f   :  { %1184 = vmatpush1.bf16.msra.mxu0 %v3602_v48 }
  0x60   :  { %1185 = vmatprep.subr.bf16.mxu0 %v3625_v55 }
  0x63   :  { %1186 = vmatpush1.bf16.msra.mxu0 %v3647_v62 }
  0x64   :  { %1187 = vmatprep.subr.bf16.mxu0 %v3653_v0 }
  0x67   :  { %1188 = vmatpush1.bf16.msra.mxu0 %v3659_v1 }
  0x68   :  { %1189 = vmatprep.subr.bf16.mxu0 %v3671_v5 }
  0x6b   :  { %1190 = vmatpush1.bf16.msra.mxu0 %v3681_v6 }
  0x6c   :  { %1191 = vmatprep.subr.bf16.mxu0 %v3688_v7 }
  0x6f   :  { %1192 = vmatpush1.bf16.msra.mxu0 %v3696_v17 }
  0x70   :  { %1193 = vmatprep.subr.bf16.mxu0 %v3705_v18 }
  0x73   :  { %1194 = vmatpush1.bf16.msra.mxu0 %v3713_v19 }
  0x74   :  { %1195 = vmatprep.subr.bf16.mxu0 %v3719_v20 }
  0x77   :  { %1196 = vmatpush1.bf16.msra.mxu0 %v3727_v22 }
  0x78   :  { %1197 = vmatprep.subr.bf16.mxu0 %v3733_v23 }
  0x7b   :  { %1198 = vmatpush1.bf16.msra.mxu0 %v3741_v25 }
  0x7c   :  { %1199 = vmatprep.subr.bf16.mxu0 %v3747_v26 }
  0x7f   :  { %1200 = vmatpush1.bf16.msra.mxu0 %v3755_v28 }
  0x80   :  { %1201 = vmatprep.subr.bf16.mxu0 %v3761_v30 }
  0x83   :  { %1202 = vmatpush1.bf16.msra.mxu0 %v3769_v31 }
  0xd9   :  { %v3139_v32 = vpop.f32.mrb[0].mxu0 }
  0xda   :  { %v167_v33 = vadd.f32 %v3139_v32, %v3818_v9  ;;  %v158_v34 = vpop.f32.mrb[1].mxu0 }
  0xdb   :  { %v3140_v35 = vpop.f32.mrb[2].mxu0  ;;  %v159_v38 = vadd.f32 %v3818_v9, %v158_v34 }
  0xdc   :  { %v170_v36 = vadd.f32 %v3140_v35, %v3818_v9  ;;  %v161_v37 = vpop.f32.mrb[3].mxu0 }
  0xdd   :  { %v162_v39 = vadd.f32 %v3818_v9, %v161_v37  ;;  %v3157_v45 = vpop.f32.mrb[0].mxu1 }
  0xde   :  { %v3824_v40 = vpack.c.bf16 %v170_v36, %v167_v33  ;;  %v339_v46 = vadd.f32 %v3157_v45, %v3831_v44  ;;  %v330_v47 = vpop.f32.mrb[1].mxu1 }
  0xdf   :  { %v3826_v43 = vpack.c.bf16 %v162_v39, %v159_v38  ;;  %v331_v49 = vadd.f32 %v3831_v44, %v330_v47  ;;  %v3158_v50 = vpop.f32.mrb[2].mxu1 }
  0xe0   :  { %v342_v51 = vadd.f32 %v3158_v50, %v3831_v44  ;;  %v333_v52 = vpop.f32.mrb[3].mxu1 }
  0xe1   :  { %v3143_v53 = vpop.f32.mrb[4].mxu0  ;;  %v334_v54 = vadd.f32 %v3831_v44, %v333_v52 }
  0xe2   :  { %v183_v56 = vadd.f32 %v3143_v53, %v3818_v9  ;;  %v174_v57 = vpop.f32.mrb[5].mxu0  ;;  %v3838_v58 = vpack.c.bf16 %v342_v51, %v339_v46 }
  0xe3   :  { %v175_v59 = vadd.f32 %v3818_v9, %v174_v57  ;;  %v3144_v60 = vpop.f32.mrb[6].mxu0  ;;  %v3841_v61 = vpack.c.bf16 %v334_v54, %v331_v49 }
  0xe4   :  { %v186_v63 = vadd.f32 %v3144_v60, %v3818_v9  ;;  %v177_v2 = vpop.f32.mrb[7].mxu0 }
  0xe5   :  { %4277 = vst [vmem:[#allocation10_spill] sm:$0xff] %v3841_v61  ;;  %v178_v3 = vadd.f32 %v3818_v9, %v177_v2  ;;  %v3161_v15 = vpop.f32.mrb[4].mxu1 }
  0xe6   :  { %v3845_v4 = vpack.c.bf16 %v186_v63, %v183_v56  ;;  %v355_v32 = vadd.f32 %v3161_v15, %v3831_v44  ;;  %v346_v33 = vpop.f32.mrb[5].mxu1 }
  0xe7   :  { %v3847_v16 = vpack.c.bf16 %v178_v3, %v175_v59  ;;  %v347_v34 = vadd.f32 %v3831_v44, %v346_v33  ;;  %v3162_v35 = vpop.f32.mrb[6].mxu1 }
  0xe8   :  { %v358_v36 = vadd.f32 %v3162_v35, %v3831_v44  ;;  %v349_v37 = vpop.f32.mrb[7].mxu1 }
  0xe9   :  { %v3147_v38 = vpop.f32.mrb[8].mxu0  ;;  %v350_v39 = vadd.f32 %v3831_v44, %v349_v37 }
  0xea   :  { %v199_v45 = vadd.f32 %v3147_v38, %v3818_v9  ;;  %v190_v46 = vpop.f32.mrb[9].mxu0  ;;  %v3854_v47 = vpack.c.bf16 %v358_v36, %v355_v32 }
  0xeb   :  { %v191_v49 = vadd.f32 %v3818_v9, %v190_v46  ;;  %v3148_v50 = vpop.f32.mrb[10].mxu0  ;;  %v3857_v51 = vpack.c.bf16 %v350_v39, %v347_v34 }
  0xec   :  { %v202_v52 = vadd.f32 %v3148_v50, %v3818_v9  ;;  %v193_v53 = vpop.f32.mrb[11].mxu0 }
  0xed   :  { %v194_v54 = vadd.f32 %v3818_v9, %v193_v53  ;;  %v3165_v57 = vpop.f32.mrb[8].mxu1 }
  0xee   :  { %v3861_v56 = vpack.c.bf16 %v202_v52, %v199_v45  ;;  %v371_v60 = vadd.f32 %v3165_v57, %v3831_v44  ;;  %v362_v63 = vpop.f32.mrb[9].mxu1 }
  0xef   :  { %v3863_v59 = vpack.c.bf16 %v194_v54, %v191_v49  ;;  %v363_v2 = vadd.f32 %v3831_v44, %v362_v63  ;;  %v3166_v3 = vpop.f32.mrb[10].mxu1 }
  0xf0   :  { %v374_v15 = vadd.f32 %v3166_v3, %v3831_v44  ;;  %v365_v32 = vpop.f32.mrb[11].mxu1 }
  0xf1   :  { %v3151_v33 = vpop.f32.mrb[12].mxu0  ;;  %v366_v34 = vadd.f32 %v3831_v44, %v365_v32 }
  0xf2   :  { %v215_v35 = vadd.f32 %v3151_v33, %v3818_v9  ;;  %v206_v36 = vpop.f32.mrb[13].mxu0  ;;  %v3870_v37 = vpack.c.bf16 %v374_v15, %v371_v60 }
  0xf3   :  { %v207_v38 = vadd.f32 %v3818_v9, %v206_v36  ;;  %v3152_v39 = vpop.f32.mrb[14].mxu0  ;;  %v3873_v45 = vpack.c.bf16 %v366_v34, %v363_v2 }
  0xf4   :  { %v218_v46 = vadd.f32 %v3152_v39, %v3818_v9  ;;  %v209_v49 = vpop.f32.mrb[15].mxu0 }
  0xf5   :  { %v210_v50 = vadd.f32 %v3818_v9, %v209_v49  ;;  %v3169_v53 = vpop.f32.mrb[12].mxu1 }
  0xf6   :  { %v3877_v52 = vpack.c.bf16 %v218_v46, %v215_v35  ;;  %v387_v57 = vadd.f32 %v3169_v53, %v3831_v44  ;;  %v378_v63 = vpop.f32.mrb[13].mxu1  ;;  %v411_v35 = vunpack.c.l.bf16 %v3826_v43  ;;  %v413_v46 = vunpack.c.h.bf16 %v3826_v43  ;;  %v4011_v43 = vld [vmem:[%s4271_s4 + $0x74] ss:$8 sps:$4 sm:$0xff]  }
  0xf7   :  { %v3879_v54 = vpack.c.bf16 %v210_v50, %v207_v38  ;;  %v379_v60 = vadd.f32 %v3831_v44, %v378_v63  ;;  %v3170_v3 = vpop.f32.mrb[14].mxu1 }
  0xf8   :  { %v390_v15 = vadd.f32 %v3170_v3, %v3831_v44  ;;  %v381_v2 = vpop.f32.mrb[15].mxu1 }
  0xf9   :  { %v382_v32 = vadd.f32 %v3831_v44, %v381_v2 }
  0xfa   :  { %v400_v33 = vpack.c.bf16 %v390_v15, %v387_v57 }
  0xfb   :  { %v3885_v34 = vpack.c.bf16 %v382_v32, %v379_v60 }
  0xfc   :  { %v412_v9 = vunpack.c.l.bf16 %v400_v33  ;;  %v414_v53 = vunpack.c.h.bf16 %v400_v33  ;;  %v4023_v33 = vld [vmem:[%s4271_s4 + $0x84] ss:$8 sps:$4 sm:$0xff]  }
 0x119   :  { %v647_v36 = vpop.f32.mrb[16].mxu0 }
 0x11a   :  { %v656_v38 = vadd.f32 %v647_v36, %v411_v35  ;;  %v649_v39 = vpop.f32.mrb[17].mxu0  ;;  %v4041_v35 = vld [vmem:[%s4271_s4 + $0x90] ss:$8 sps:$4 sm:$0xff]   ;;  %v4047_v36 = vld [vmem:[%s4271_s4 + $0xa4] ss:$8 sps:$4 sm:$0xff]  }
 0x11b   :  { %v657_v49 = vadd.f32 %v649_v39, %v412_v9  ;;  %v651_v50 = vpop.f32.mrb[18].mxu0  ;;  %v4035_v9 = vld [vmem:[%s4271_s4 + $0x94] ss:$8 sps:$4 sm:$0xff]   ;;  %v969_v39 = vunpack.c.l.bf16 %v3847_v16 }
 0x11c   :  { %3274 = vtanh.f32 %v656_v38  ;;  %v658_v63 = vadd.f32 %v651_v50, %v413_v46  ;;  %v653_v3 = vpop.f32.mrb[19].mxu0  ;;  %v4053_v38 = vld [vmem:[%s4271_s4 + $0xa0] ss:$8 sps:$4 sm:$0xff]  }
 0x11d   :  { %3276 = vtanh.f32 %v657_v49  ;;  %v659_v61 = vadd.f32 %v653_v3, %v414_v53  ;;  %v970_v49 = vunpack.c.l.bf16 %v3870_v37 }
 0x11e   :  { %3278 = vtanh.f32 %v658_v63  ;;  %v971_v63 = vunpack.c.h.bf16 %v3847_v16  ;;  %v4085_v16 = vld [vmem:[%s4271_s4 + $0xb4] ss:$8 sps:$4 sm:$0xff]  }
 0x11f   :  { %3280 = vtanh.f32 %v659_v61  ;;  %v4017_v61 = vld [vmem:[%s4271_s4 + $0x70] ss:$8 sps:$4 sm:$0xff]  }
 0x126   :  { %v3275_v44 = vpop.eup %3274 }
 0x127   :  { %v3277_v57 = vpop.eup %3276 }
 0x128   :  { %v3279_v60 = vpop.eup %3278 }
 0x129   :  { %v3281_v15 = vpop.eup %3280  ;;  %v3026_v2 = vpack.c.bf16 %v3279_v60, %v3275_v44 }
 0x12a   :  { %v3031_v32 = vpack.c.bf16 %v3281_v15, %v3277_v57  ;;  %v972_v57 = vunpack.c.h.bf16 %v3870_v37  ;;  %v4090_v37 = vld [vmem:[%s4271_s4 + $0xb0] ss:$8 sps:$4 sm:$0xff]  }
 0x12b   :  { %3027 = vst [vmem:[#allocation4] sm:$0xff] %v3026_v2  }
 0x12c   :  { %3103 = vst [vmem:[#allocation6 + $0x38] sm:$0xff] %v3031_v32   ;;  %924 = vmatprep.mubr.bf16.mxu1 %v3031_v32 }
 0x12d   :  { %925 = vmatmul.mubr.bf16.vlgmr.msra.gmra.mrb[16].mxu1 %v3026_v2 }
 0x12e   :  { %1451 = vmatpush1.bf16.msra.mxu1 %v3456_v8  ;;  %v690_v8 = vunpack.c.l.bf16 %v3824_v40 }
 0x12f   :  { %1452 = vmatprep.subr.bf16.mxu1 %v3468_v10 }
 0x132   :  { %1453 = vmatpush1.bf16.msra.mxu1 %v3475_v11  ;;  %v691_v11 = vunpack.c.l.bf16 %v3885_v34 }
 0x133   :  { %1454 = vmatprep.subr.bf16.mxu1 %v3481_v12 }
 0x136   :  { %1455 = vmatpush1.bf16.msra.mxu1 %v3487_v13 }
 0x137   :  { %1456 = vmatprep.subr.bf16.mxu1 %v3492_v14  ;;  %v692_v14 = vunpack.c.h.bf16 %v3824_v40  ;;  %v4005_v40 = vld [vmem:[%s4271_s4 + $0x60] ss:$8 sps:$4 sm:$0xff]  }
 0x13a   :  { %1457 = vmatpush1.bf16.msra.mxu1 %v3516_v21 }
 0x13b   :  { %1458 = vmatprep.subr.bf16.mxu1 %v3523_v24 }
 0x13e   :  { %1459 = vmatpush1.bf16.msra.mxu1 %v3534_v27  ;;  %v693_v27 = vunpack.c.h.bf16 %v3885_v34  ;;  %v4029_v34 = vld [vmem:[%s4271_s4 + $0x80] ss:$8 sps:$4 sm:$0xff]  }
 0x13f   :  { %1460 = vmatprep.subr.bf16.mxu1 %v3540_v29 }
 0x142   :  { %1461 = vmatpush1.bf16.msra.mxu1 %v3578_v41 }
 0x143   :  { %1462 = vmatprep.subr.bf16.mxu1 %v3583_v42 }
 0x146   :  { %1463 = vmatpush1.bf16.msra.mxu1 %v3602_v48 }
 0x147   :  { %1464 = vmatprep.subr.bf16.mxu1 %v3625_v55 }
 0x14a   :  { %1465 = vmatpush1.bf16.msra.mxu1 %v3647_v62 }
 0x14b   :  { %1466 = vmatprep.subr.bf16.mxu1 %v3653_v0 }
 0x14e   :  { %1467 = vmatpush1.bf16.msra.mxu1 %v3659_v1 }
 0x14f   :  { %1468 = vmatprep.subr.bf16.mxu1 %v3671_v5 }
 0x152   :  { %1469 = vmatpush1.bf16.msra.mxu1 %v3681_v6  ;;  %v3927_v6 = vld [vmem:[%s4271_s4] ss:$8 sps:$4 sm:$0xff]  }
 0x153   :  { %1470 = vmatprep.subr.bf16.mxu1 %v3688_v7  ;;  %v3932_v7 = vld [vmem:[%s4271_s4 + $0x4] ss:$8 sps:$4 sm:$0xff]  }
 0x154   :  { %1729 = vmatprep.subr.bf16.mxu0 %v3932_v7 }
 0x156   :  { %1471 = vmatpush1.bf16.msra.mxu1 %v3696_v17  ;;  %v3937_v17 = vld [vmem:[%s4271_s4 + $0x14] ss:$8 sps:$4 sm:$0xff]  }
 0x157   :  { %1472 = vmatprep.subr.bf16.mxu1 %v3705_v18  ;;  %v3945_v18 = vld [vmem:[%s4271_s4 + $0x10] ss:$8 sps:$4 sm:$0xff]  }
 0x15a   :  { %1473 = vmatpush1.bf16.msra.mxu1 %v3713_v19  ;;  %v3951_v19 = vld [vmem:[%s4271_s4 + $0x24] ss:$8 sps:$4 sm:$0xff]  }
 0x15b   :  { %1474 = vmatprep.subr.bf16.mxu1 %v3719_v20  ;;  %v3957_v20 = vld [vmem:[%s4271_s4 + $0x20] ss:$8 sps:$4 sm:$0xff]  }
 0x15e   :  { %1475 = vmatpush1.bf16.msra.mxu1 %v3727_v22  ;;  %v3963_v22 = vld [vmem:[%s4271_s4 + $0x34] ss:$8 sps:$4 sm:$0xff]  }
 0x15f   :  { %1476 = vmatprep.subr.bf16.mxu1 %v3733_v23  ;;  %v3969_v23 = vld [vmem:[%s4271_s4 + $0x30] ss:$8 sps:$4 sm:$0xff]  }
 0x162   :  { %1477 = vmatpush1.bf16.msra.mxu1 %v3741_v25  ;;  %v3975_v25 = vld [vmem:[%s4271_s4 + $0x44] ss:$8 sps:$4 sm:$0xff]  }
 0x163   :  { %1478 = vmatprep.subr.bf16.mxu1 %v3747_v26  ;;  %v3981_v26 = vld [vmem:[%s4271_s4 + $0x40] ss:$8 sps:$4 sm:$0xff]  }
 0x166   :  { %1479 = vmatpush1.bf16.msra.mxu1 %v3755_v28  ;;  %v3987_v28 = vld [vmem:[%s4271_s4 + $0x54] ss:$8 sps:$4 sm:$0xff]  }
 0x167   :  { %1480 = vmatprep.subr.bf16.mxu1 %v3761_v30  ;;  %v3993_v30 = vld [vmem:[%s4271_s4 + $0x50] ss:$8 sps:$4 sm:$0xff]  }
 0x16a   :  { %1481 = vmatpush1.bf16.msra.mxu1 %v3769_v31  ;;  %v3999_v31 = vld [vmem:[%s4271_s4 + $0x64] ss:$8 sps:$4 sm:$0xff]  }
 0x16b   :  { %2008 = vmatprep.subr.bf16.mxu1 %v3932_v7 }
 0x200   :  { %v926_v10 = vpop.f32.mrb[16].mxu1 }
 0x201   :  { %v935_v12 = vadd.f32 %v926_v10, %v690_v8  ;;  %v928_v13 = vpop.f32.mrb[17].mxu1 }
 0x202   :  { %v936_v21 = vadd.f32 %v928_v13, %v691_v11  ;;  %v930_v24 = vpop.f32.mrb[18].mxu1 }
 0x203   :  { %3282 = vtanh.f32 %v935_v12  ;;  %v937_v29 = vadd.f32 %v930_v24, %v692_v14  ;;  %v932_v41 = vpop.f32.mrb[19].mxu1  ;;  %v4099_v14 = vld [vmem:[%s4271_s4 + $0xc4] ss:$8 sps:$4 sm:$0xff]   ;;  %v4113_v24 = vld [vmem:[%s4271_s4 + $0xd0] ss:$8 sps:$4 sm:$0xff]  }
 0x204   :  { %3284 = vtanh.f32 %v936_v21  ;;  %v938_v42 = vadd.f32 %v932_v41, %v693_v27  ;;  %v4104_v21 = vld [vmem:[%s4271_s4 + $0xc0] ss:$8 sps:$4 sm:$0xff]   ;;  %v4118_v27 = vld [vmem:[%s4271_s4 + $0xd4] ss:$8 sps:$4 sm:$0xff]  }
 0x205   :  { %3286 = vtanh.f32 %v937_v29  ;;  %v4123_v29 = vld [vmem:[%s4271_s4 + $0xe4] ss:$8 sps:$4 sm:$0xff]   ;;  %v4131_v41 = vld [vmem:[%s4271_s4 + $0xe0] ss:$8 sps:$4 sm:$0xff]  }
 0x206   :  { %3288 = vtanh.f32 %v938_v42  ;;  %v4138_v42 = vld [vmem:[%s4271_s4 + $0xf4] ss:$8 sps:$4 sm:$0xff]  }
 0x20d   :  { %v3283_v48 = vpop.eup %3282 }
 0x20e   :  { %v3285_v55 = vpop.eup %3284 }
 0x20f   :  { %v3287_v62 = vpop.eup %3286 }
 0x210   :  { %v3289_v0 = vpop.eup %3288  ;;  %v3036_v1 = vpack.c.bf16 %v3287_v62, %v3283_v48  ;;  %v4145_v48 = vld [vmem:[%s4271_s4 + $0xf0] ss:$8 sps:$4 sm:$0xff]   ;;  %s3387_s4 = smov [#allocation4]  }
 0x211   :  { %v3041_v5 = vpack.c.bf16 %v3289_v0, %v3285_v55  ;;  %v1248_v55 = vunpack.c.l.bf16 %v3845_v4  ;;  %v1249_v0 = vunpack.c.l.bf16 %v3873_v45  ;;  %s2646_s22 = sshll.u32 %s3387_s4, 4  ;;  %s2647_s22 = int_to_ptr.vmem [resolvable:$true] %s2646_s22 }
 0x212   :  { %3104 = vst [vmem:[#allocation4 + $0x8] sm:$0xff] %v3036_v1   ;;  %s3338_s25 = scalar_lea.vmem %s2647_s22, 1024  ;;  %p3343_p1 = scmp.lt.s32.totalorder %s2647_s22, %s2647_s22 }
 0x213   :  { %3105 = vst [vmem:[#allocation6 + $0x30] sm:$0xff] %v3041_v5   ;;  %1203 = vmatprep.mubr.bf16.mxu0 %v3041_v5  ;;  %p3339_p0 = scmp.ne.s32.totalorder %s2647_s22, %s3338_s25  ;;  %p3344_p2 = scmp.lt.s32.totalorder %s3338_s25, %s3338_s25 }
 0x214   :  { %1204 = vmatmul.mubr.bf16.vlgmr.msra.gmra.mrb[20].mxu0 %v3036_v1 }
 0x215   :  { %1730 = vmatpush1.bf16.msra.mxu0 %v3927_v6  ;;  %p3345_p3 = por %p3344_p2, %p3343_p1 }
 0x216   :  { %1731 = vmatprep.subr.bf16.mxu0 %v3937_v17 }
 0x217   :  { %p3346_p4 = pnand %p3345_p3, %p3339_p0 }
 0x219   :  { %1732 = vmatpush1.bf16.msra.mxu0 %v3945_v18 }
 0x21a   :  { %1733 = vmatprep.subr.bf16.mxu0 %v3951_v19 }
 0x21d   :  { %1734 = vmatpush1.bf16.msra.mxu0 %v3957_v20 }
 0x21e   :  { %1735 = vmatprep.subr.bf16.mxu0 %v3963_v22 }
 0x221   :  { %1736 = vmatpush1.bf16.msra.mxu0 %v3969_v23 }
 0x222   :  { %1737 = vmatprep.subr.bf16.mxu0 %v3975_v25 }
 0x225   :  { %1738 = vmatpush1.bf16.msra.mxu0 %v3981_v26 }
 0x226   :  { %1739 = vmatprep.subr.bf16.mxu0 %v3987_v28 }
 0x229   :  { %1740 = vmatpush1.bf16.msra.mxu0 %v3993_v30 }
 0x22a   :  { %1741 = vmatprep.subr.bf16.mxu0 %v3999_v31 }
 0x22d   :  { %1742 = vmatpush1.bf16.msra.mxu0 %v4005_v40 }
 0x22e   :  { %1743 = vmatprep.subr.bf16.mxu0 %v4011_v43 }
 0x231   :  { %1744 = vmatpush1.bf16.msra.mxu0 %v4017_v61 }
 0x232   :  { %1745 = vmatprep.subr.bf16.mxu0 %v4023_v33 }
 0x235   :  { %1746 = vmatpush1.bf16.msra.mxu0 %v4029_v34 }
 0x236   :  { %1747 = vmatprep.subr.bf16.mxu0 %v4035_v9 }
 0x239   :  { %1748 = vmatpush1.bf16.msra.mxu0 %v4041_v35 }
 0x23a   :  { %1749 = vmatprep.subr.bf16.mxu0 %v4047_v36 }
 0x23d   :  { %1750 = vmatpush1.bf16.msra.mxu0 %v4053_v38 }
 0x23e   :  { %1751 = vmatprep.subr.bf16.mxu0 %v4085_v16 }
 0x241   :  { %1752 = vmatpush1.bf16.msra.mxu0 %v4090_v37 }
 0x242   :  { %1753 = vmatprep.subr.bf16.mxu0 %v4099_v14 }
 0x245   :  { %1754 = vmatpush1.bf16.msra.mxu0 %v4104_v21 }
 0x246   :  { %1755 = vmatprep.subr.bf16.mxu0 %v4118_v27 }
 0x249   :  { %1756 = vmatpush1.bf16.msra.mxu0 %v4113_v24 }
 0x24a   :  { %1757 = vmatprep.subr.bf16.mxu0 %v4123_v29 }
 0x24d   :  { %1758 = vmatpush1.bf16.msra.mxu0 %v4131_v41 }
 0x24e   :  { %1759 = vmatprep.subr.bf16.mxu0 %v4138_v42 }
 0x251   :  { %1760 = vmatpush1.bf16.msra.mxu0 %v4145_v48 }
 0x252   :  { %2287 = vmatprep.subr.bf16.mxu0 %v3932_v7 }
 0x2e7   :  { %v1205_v46 = vpop.f32.mrb[20].mxu0 }
 0x2e8   :  { %v1214_v50 = vadd.f32 %v1205_v46, %v969_v39  ;;  %v1207_v53 = vpop.f32.mrb[21].mxu0  ;;  %v1250_v39 = vunpack.c.h.bf16 %v3845_v4  ;;  %v1527_v4 = vunpack.c.l.bf16 %v3863_v59 }
 0x2e9   :  { %v1215_v3 = vadd.f32 %v1207_v53, %v970_v49  ;;  %v1209_v44 = vpop.f32.mrb[22].mxu0 }
 0x2ea   :  { %3290 = vtanh.f32 %v1214_v50  ;;  %v1216_v60 = vadd.f32 %v1209_v44, %v971_v63  ;;  %v1211_v15 = vpop.f32.mrb[23].mxu0  ;;  %v1251_v50 = vunpack.c.h.bf16 %v3873_v45 }
 0x2eb   :  { %3292 = vtanh.f32 %v1215_v3  ;;  %v1217_v2 = vadd.f32 %v1211_v15, %v972_v57 }
 0x2ec   :  { %3294 = vtanh.f32 %v1216_v60 }
 0x2ed   :  { %3296 = vtanh.f32 %v1217_v2 }
 0x2f4   :  { %v3291_v32 = vpop.eup %3290 }
 0x2f5   :  { %v3293_v8 = vpop.eup %3292 }
 0x2f6   :  { %v3295_v10 = vpop.eup %3294 }
 0x2f7   :  { %v3297_v11 = vpop.eup %3296  ;;  %v3046_v12 = vpack.c.bf16 %v3295_v10, %v3291_v32  ;;  %v1528_v32 = vunpack.c.l.bf16 %v3854_v47 }
 0x2f8   :  { %v3051_v13 = vpack.c.bf16 %v3297_v11, %v3293_v8  ;;  %v1529_v11 = vunpack.c.h.bf16 %v3863_v59 }
 0x2f9   :  { %3106 = vst [vmem:[#allocation4 + $0x10] sm:$0xff] %v3046_v12  }
 0x2fa   :  { %3107 = vst [vmem:[#allocation6 + $0x28] sm:$0xff] %v3051_v13   ;;  %1482 = vmatprep.mubr.bf16.mxu1 %v3051_v13 }
 0x2fb   :  { %1483 = vmatmul.mubr.bf16.vlgmr.msra.gmra.mrb[20].mxu1 %v3046_v12 }
 0x2fc   :  { %2009 = vmatpush1.bf16.msra.mxu1 %v3927_v6 }
 0x2fd   :  { %2010 = vmatprep.subr.bf16.mxu1 %v3937_v17 }
 0x300   :  { %2011 = vmatpush1.bf16.msra.mxu1 %v3945_v18 }
 0x301   :  { %2012 = vmatprep.subr.bf16.mxu1 %v3951_v19 }
 0x304   :  { %2013 = vmatpush1.bf16.msra.mxu1 %v3957_v20 }
 0x305   :  { %2014 = vmatprep.subr.bf16.mxu1 %v3963_v22 }
 0x308   :  { %2015 = vmatpush1.bf16.msra.mxu1 %v3969_v23 }
 0x309   :  { %2016 = vmatprep.subr.bf16.mxu1 %v3975_v25 }
 0x30c   :  { %2017 = vmatpush1.bf16.msra.mxu1 %v3981_v26 }
 0x30d   :  { %2018 = vmatprep.subr.bf16.mxu1 %v3987_v28 }
 0x310   :  { %2019 = vmatpush1.bf16.msra.mxu1 %v3993_v30 }
 0x311   :  { %2020 = vmatprep.subr.bf16.mxu1 %v3999_v31 }
 0x314   :  { %2021 = vmatpush1.bf16.msra.mxu1 %v4005_v40 }
 0x315   :  { %2022 = vmatprep.subr.bf16.mxu1 %v4011_v43 }
 0x318   :  { %2023 = vmatpush1.bf16.msra.mxu1 %v4017_v61 }
 0x319   :  { %2024 = vmatprep.subr.bf16.mxu1 %v4023_v33 }
 0x31c   :  { %2025 = vmatpush1.bf16.msra.mxu1 %v4029_v34 }
 0x31d   :  { %2026 = vmatprep.subr.bf16.mxu1 %v4035_v9 }
 0x320   :  { %2027 = vmatpush1.bf16.msra.mxu1 %v4041_v35 }
 0x321   :  { %2028 = vmatprep.subr.bf16.mxu1 %v4047_v36 }
 0x324   :  { %2029 = vmatpush1.bf16.msra.mxu1 %v4053_v38 }
 0x325   :  { %2030 = vmatprep.subr.bf16.mxu1 %v4085_v16 }
 0x328   :  { %2031 = vmatpush1.bf16.msra.mxu1 %v4090_v37 }
 0x329   :  { %2032 = vmatprep.subr.bf16.mxu1 %v4099_v14 }
 0x32c   :  { %2033 = vmatpush1.bf16.msra.mxu1 %v4104_v21 }
 0x32d   :  { %2034 = vmatprep.subr.bf16.mxu1 %v4118_v27 }
 0x330   :  { %2035 = vmatpush1.bf16.msra.mxu1 %v4113_v24 }
 0x331   :  { %2036 = vmatprep.subr.bf16.mxu1 %v4123_v29 }
 0x334   :  { %2037 = vmatpush1.bf16.msra.mxu1 %v4131_v41 }
 0x335   :  { %2038 = vmatprep.subr.bf16.mxu1 %v4138_v42 }
 0x338   :  { %2039 = vmatpush1.bf16.msra.mxu1 %v4145_v48 }
 0x339   :  { %2566 = vmatprep.subr.bf16.mxu1 %v3932_v7 }
 0x3ce   :  { %v1484_v62 = vpop.f32.mrb[20].mxu1 }
 0x3cf   :  { %v1493_v1 = vadd.f32 %v1484_v62, %v1248_v55  ;;  %v1486_v5 = vpop.f32.mrb[21].mxu1  ;;  %v1530_v55 = vunpack.c.h.bf16 %v3854_v47  ;;  %v1806_v47 = vunpack.c.l.bf16 %v3861_v56 }
 0x3d0   :  { %v1494_v46 = vadd.f32 %v1486_v5, %v1249_v0  ;;  %v1488_v49 = vpop.f32.mrb[22].mxu1 }
 0x3d1   :  { %3298 = vtanh.f32 %v1493_v1  ;;  %v1495_v53 = vadd.f32 %v1488_v49, %v1250_v39  ;;  %v1490_v63 = vpop.f32.mrb[23].mxu1 }
 0x3d2   :  { %3300 = vtanh.f32 %v1494_v46  ;;  %v1496_v3 = vadd.f32 %v1490_v63, %v1251_v50 }
 0x3d3   :  { %3302 = vtanh.f32 %v1495_v53 }
 0x3d4   :  { %3304 = vtanh.f32 %v1496_v3  ;;  %v4278_v3 = vld [vmem:[#allocation10_spill] sm:$0xff] }
 0x3db   :  { %v3299_v7 = vpop.eup %3298 }
 0x3dc   :  { %v3301_v44 = vpop.eup %3300 }
 0x3dd   :  { %v3303_v57 = vpop.eup %3302 }
 0x3de   :  { %v3305_v60 = vpop.eup %3304  ;;  %v3056_v15 = vpack.c.bf16 %v3303_v57, %v3299_v7  ;;  %v2365_v7 = vunpack.c.l.bf16 %v4278_v3 }
 0x3df   :  { %v3061_v2 = vpack.c.bf16 %v3305_v60, %v3301_v44  ;;  %v2366_v60 = vunpack.c.h.bf16 %v3877_v52 }
 0x3e0   :  { %3108 = vst [vmem:[#allocation4 + $0x18] sm:$0xff] %v3056_v15  }
 0x3e1   :  { %3109 = vst [vmem:[#allocation6 + $0x20] sm:$0xff] %v3061_v2   ;;  %1761 = vmatprep.mubr.bf16.mxu0 %v3061_v2 }
 0x3e2   :  { %1762 = vmatmul.mubr.bf16.vlgmr.msra.gmra.mrb[24].mxu0 %v3056_v15 }
 0x3e3   :  { %2288 = vmatpush1.bf16.msra.mxu0 %v3927_v6 }
 0x3e4   :  { %2289 = vmatprep.subr.bf16.mxu0 %v3937_v17 }
 0x3e7   :  { %2290 = vmatpush1.bf16.msra.mxu0 %v3945_v18 }
 0x3e8   :  { %2291 = vmatprep.subr.bf16.mxu0 %v3951_v19 }
 0x3eb   :  { %2292 = vmatpush1.bf16.msra.mxu0 %v3957_v20 }
 0x3ec   :  { %2293 = vmatprep.subr.bf16.mxu0 %v3963_v22 }
 0x3ef   :  { %2294 = vmatpush1.bf16.msra.mxu0 %v3969_v23 }
 0x3f0   :  { %2295 = vmatprep.subr.bf16.mxu0 %v3975_v25 }
 0x3f3   :  { %2296 = vmatpush1.bf16.msra.mxu0 %v3981_v26 }
 0x3f4   :  { %2297 = vmatprep.subr.bf16.mxu0 %v3987_v28 }
 0x3f7   :  { %2298 = vmatpush1.bf16.msra.mxu0 %v3993_v30 }
 0x3f8   :  { %2299 = vmatprep.subr.bf16.mxu0 %v3999_v31 }
 0x3fb   :  { %2300 = vmatpush1.bf16.msra.mxu0 %v4005_v40 }
 0x3fc   :  { %2301 = vmatprep.subr.bf16.mxu0 %v4011_v43 }
 0x3ff   :  { %2302 = vmatpush1.bf16.msra.mxu0 %v4017_v61 }
 0x400   :  { %2303 = vmatprep.subr.bf16.mxu0 %v4023_v33 }
 0x403   :  { %2304 = vmatpush1.bf16.msra.mxu0 %v4029_v34 }
 0x404   :  { %2305 = vmatprep.subr.bf16.mxu0 %v4035_v9 }
 0x407   :  { %2306 = vmatpush1.bf16.msra.mxu0 %v4041_v35 }
 0x408   :  { %2307 = vmatprep.subr.bf16.mxu0 %v4047_v36 }
 0x40b   :  { %2308 = vmatpush1.bf16.msra.mxu0 %v4053_v38 }
 0x40c   :  { %2309 = vmatprep.subr.bf16.mxu0 %v4085_v16 }
 0x40f   :  { %2310 = vmatpush1.bf16.msra.mxu0 %v4090_v37 }
 0x410   :  { %2311 = vmatprep.subr.bf16.mxu0 %v4099_v14 }
 0x413   :  { %2312 = vmatpush1.bf16.msra.mxu0 %v4104_v21 }
 0x414   :  { %2313 = vmatprep.subr.bf16.mxu0 %v4118_v27 }
 0x417   :  { %2314 = vmatpush1.bf16.msra.mxu0 %v4113_v24 }
 0x418   :  { %2315 = vmatprep.subr.bf16.mxu0 %v4123_v29 }
 0x41b   :  { %2316 = vmatpush1.bf16.msra.mxu0 %v4131_v41 }
 0x41c   :  { %2317 = vmatprep.subr.bf16.mxu0 %v4138_v42 }
 0x41f   :  { %2318 = vmatpush1.bf16.msra.mxu0 %v4145_v48 }
 0x4b5   :  { %v1763_v45 = vpop.f32.mrb[24].mxu0 }
 0x4b6   :  { %v1772_v8 = vadd.f32 %v1763_v45, %v1527_v4  ;;  %v1765_v10 = vpop.f32.mrb[25].mxu0  ;;  %v2367_v4 = vunpack.c.h.bf16 %v4278_v3 }
 0x4b7   :  { %v1773_v12 = vadd.f32 %v1765_v10, %v1528_v32  ;;  %v1767_v13 = vpop.f32.mrb[26].mxu0 }
 0x4b8   :  { %3306 = vtanh.f32 %v1772_v8  ;;  %v1774_v62 = vadd.f32 %v1767_v13, %v1529_v11  ;;  %v1769_v0 = vpop.f32.mrb[27].mxu0 }
 0x4b9   :  { %3308 = vtanh.f32 %v1773_v12  ;;  %v1775_v1 = vadd.f32 %v1769_v0, %v1530_v55 }
 0x4ba   :  { %3310 = vtanh.f32 %v1774_v62 }
 0x4bb   :  { %3312 = vtanh.f32 %v1775_v1 }
 0x4c2   :  { %v3307_v5 = vpop.eup %3306 }
 0x4c3   :  { %v3309_v39 = vpop.eup %3308 }
 0x4c4   :  { %v3311_v46 = vpop.eup %3310 }
 0x4c5   :  { %v3313_v49 = vpop.eup %3312  ;;  %v3066_v50 = vpack.c.bf16 %v3311_v46, %v3307_v5 }
 0x4c6   :  { %v3071_v53 = vpack.c.bf16 %v3313_v49, %v3309_v39 }
 0x4c7   :  { %3110 = vst [vmem:[#allocation4 + $0x20] sm:$0xff] %v3066_v50  }
 0x4c8   :  { %3111 = vst [vmem:[#allocation6 + $0x18] sm:$0xff] %v3071_v53   ;;  %2040 = vmatprep.mubr.bf16.mxu1 %v3071_v53 }
 0x4c9   :  { %2041 = vmatmul.mubr.bf16.vlgmr.msra.gmra.mrb[24].mxu1 %v3066_v50 }
 0x4ca   :  { %2567 = vmatpush1.bf16.msra.mxu1 %v3927_v6  ;;  %v1807_v6 = vunpack.c.l.bf16 %v3857_v51 }
 0x4cb   :  { %2568 = vmatprep.subr.bf16.mxu1 %v3937_v17 }
 0x4ce   :  { %2569 = vmatpush1.bf16.msra.mxu1 %v3945_v18 }
 0x4cf   :  { %2570 = vmatprep.subr.bf16.mxu1 %v3951_v19  ;;  %v1808_v19 = vunpack.c.h.bf16 %v3861_v56  ;;  %v2085_v56 = vunpack.c.l.bf16 %v3879_v54 }
 0x4d2   :  { %2571 = vmatpush1.bf16.msra.mxu1 %v3957_v20 }
 0x4d3   :  { %2572 = vmatprep.subr.bf16.mxu1 %v3963_v22 }
 0x4d6   :  { %2573 = vmatpush1.bf16.msra.mxu1 %v3969_v23  ;;  %v1809_v23 = vunpack.c.h.bf16 %v3857_v51 }
 0x4d7   :  { %2574 = vmatprep.subr.bf16.mxu1 %v3975_v25 }
 0x4da   :  { %2575 = vmatpush1.bf16.msra.mxu1 %v3981_v26 }
 0x4db   :  { %2576 = vmatprep.subr.bf16.mxu1 %v3987_v28 }
 0x4de   :  { %2577 = vmatpush1.bf16.msra.mxu1 %v3993_v30 }
 0x4df   :  { %2578 = vmatprep.subr.bf16.mxu1 %v3999_v31 }
 0x4e2   :  { %2579 = vmatpush1.bf16.msra.mxu1 %v4005_v40 }
 0x4e3   :  { %2580 = vmatprep.subr.bf16.mxu1 %v4011_v43 }
 0x4e6   :  { %2581 = vmatpush1.bf16.msra.mxu1 %v4017_v61 }
 0x4e7   :  { %2582 = vmatprep.subr.bf16.mxu1 %v4023_v33 }
 0x4ea   :  { %2583 = vmatpush1.bf16.msra.mxu1 %v4029_v34  ;;  %v2086_v34 = vunpack.c.l.bf16 %v3838_v58 }
 0x4eb   :  { %2584 = vmatprep.subr.bf16.mxu1 %v4035_v9 }
 0x4ee   :  { %2585 = vmatpush1.bf16.msra.mxu1 %v4041_v35 }
 0x4ef   :  { %2586 = vmatprep.subr.bf16.mxu1 %v4047_v36  ;;  %v2087_v36 = vunpack.c.h.bf16 %v3879_v54  ;;  %v2364_v54 = vunpack.c.l.bf16 %v3877_v52 }
 0x4f2   :  { %2587 = vmatpush1.bf16.msra.mxu1 %v4053_v38 }
 0x4f3   :  { %2588 = vmatprep.subr.bf16.mxu1 %v4085_v16 }
 0x4f6   :  { %2589 = vmatpush1.bf16.msra.mxu1 %v4090_v37  ;;  %v2088_v37 = vunpack.c.h.bf16 %v3838_v58 }
 0x4f7   :  { %2590 = vmatprep.subr.bf16.mxu1 %v4099_v14 }
 0x4fa   :  { %2591 = vmatpush1.bf16.msra.mxu1 %v4104_v21 }
 0x4fb   :  { %2592 = vmatprep.subr.bf16.mxu1 %v4118_v27 }
 0x4fe   :  { %2593 = vmatpush1.bf16.msra.mxu1 %v4113_v24 }
 0x4ff   :  { %2594 = vmatprep.subr.bf16.mxu1 %v4123_v29 }
 0x502   :  { %2595 = vmatpush1.bf16.msra.mxu1 %v4131_v41 }
 0x503   :  { %2596 = vmatprep.subr.bf16.mxu1 %v4138_v42 }
 0x506   :  { %2597 = vmatpush1.bf16.msra.mxu1 %v4145_v48 }
 0x59c   :  { %v2042_v59 = vpop.f32.mrb[24].mxu1 }
 0x59d   :  { %v2051_v17 = vadd.f32 %v2042_v59, %v1806_v47  ;;  %v2044_v18 = vpop.f32.mrb[25].mxu1 }
 0x59e   :  { %v2052_v20 = vadd.f32 %v2044_v18, %v1807_v6  ;;  %v2046_v22 = vpop.f32.mrb[26].mxu1 }
 0x59f   :  { %3314 = vtanh.f32 %v2051_v17  ;;  %v2053_v25 = vadd.f32 %v2046_v22, %v1808_v19  ;;  %v2048_v26 = vpop.f32.mrb[27].mxu1 }
 0x5a0   :  { %3316 = vtanh.f32 %v2052_v20  ;;  %v2054_v28 = vadd.f32 %v2048_v26, %v1809_v23 }
 0x5a1   :  { %3318 = vtanh.f32 %v2053_v25 }
 0x5a2   :  { %3320 = vtanh.f32 %v2054_v28 }
 0x5a9   :  { %v3315_v30 = vpop.eup %3314 }
 0x5aa   :  { %v3317_v31 = vpop.eup %3316 }
 0x5ab   :  { %v3319_v40 = vpop.eup %3318 }
 0x5ac   :  { %v3321_v43 = vpop.eup %3320  ;;  %v3076_v61 = vpack.c.bf16 %v3319_v40, %v3315_v30 }
 0x5ad   :  { %v3081_v33 = vpack.c.bf16 %v3321_v43, %v3317_v31 }
 0x5ae   :  { %3112 = vst [vmem:[#allocation4 + $0x28] sm:$0xff] %v3076_v61  }
 0x5af   :  { %3113 = vst [vmem:[#allocation6 + $0x10] sm:$0xff] %v3081_v33   ;;  %2319 = vmatprep.mubr.bf16.mxu0 %v3081_v33 }
 0x5b0   :  { %2320 = vmatmul.mubr.bf16.vlgmr.msra.gmra.mrb[28].mxu0 %v3076_v61 }
 0x683   :  { %v2321_v51 = vpop.f32.mrb[28].mxu0 }
 0x684   :  { %v2330_v9 = vadd.f32 %v2321_v51, %v2085_v56  ;;  %v2323_v35 = vpop.f32.mrb[29].mxu0 }
 0x685   :  { %v2331_v38 = vadd.f32 %v2323_v35, %v2086_v34  ;;  %v2325_v16 = vpop.f32.mrb[30].mxu0 }
 0x686   :  { %3322 = vtanh.f32 %v2330_v9  ;;  %v2332_v14 = vadd.f32 %v2325_v16, %v2087_v36  ;;  %v2327_v21 = vpop.f32.mrb[31].mxu0 }
 0x687   :  { %3324 = vtanh.f32 %v2331_v38  ;;  %v2333_v24 = vadd.f32 %v2327_v21, %v2088_v37 }
 0x688   :  { %3326 = vtanh.f32 %v2332_v14 }
 0x689   :  { %3328 = vtanh.f32 %v2333_v24 }
 0x690   :  { %v3323_v27 = vpop.eup %3322 }
 0x691   :  { %v3325_v29 = vpop.eup %3324 }
 0x692   :  { %v3327_v41 = vpop.eup %3326 }
 0x693   :  { %v3329_v42 = vpop.eup %3328  ;;  %v3086_v48 = vpack.c.bf16 %v3327_v41, %v3323_v27 }
 0x694   :  { %v3091_v63 = vpack.c.bf16 %v3329_v42, %v3325_v29 }
 0x695   :  { %3114 = vst [vmem:[#allocation4 + $0x30] sm:$0xff] %v3086_v48  }
 0x696   :  { %3115 = vst [vmem:[#allocation6 + $0x8] sm:$0xff] %v3091_v63   ;;  %2598 = vmatprep.mubr.bf16.mxu1 %v3091_v63 }
 0x697   :  { %2599 = vmatmul.mubr.bf16.vlgmr.msra.gmra.mrb[28].mxu1 %v3086_v48 }
 0x76a   :  { %v2600_v58 = vpop.f32.mrb[28].mxu1 }
 0x76b   :  { %v2609_v44 = vadd.f32 %v2600_v58, %v2364_v54  ;;  %v2602_v57 = vpop.f32.mrb[29].mxu1 }
 0x76c   :  { %v2610_v15 = vadd.f32 %v2602_v57, %v2365_v7  ;;  %v2604_v2 = vpop.f32.mrb[30].mxu1 }
 0x76d   :  { %3330 = vtanh.f32 %v2609_v44  ;;  %v2611_v45 = vadd.f32 %v2604_v2, %v2366_v60  ;;  %v2606_v32 = vpop.f32.mrb[31].mxu1 }
 0x76e   :  { %3332 = vtanh.f32 %v2610_v15  ;;  %v2612_v8 = vadd.f32 %v2606_v32, %v2367_v4 }
 0x76f   :  { %3334 = vtanh.f32 %v2611_v45 }
 0x770   :  { %3336 = vtanh.f32 %v2612_v8 }
 0x777   :  { %v3331_v10 = vpop.eup %3330 }
 0x778   :  { %v3333_v11 = vpop.eup %3332 }
 0x779   :  { %v3335_v12 = vpop.eup %3334 }
 0x77a   :  { %v3337_v52 = vpop.eup %3336  ;;  %v3096_v13 = vpack.c.bf16 %v3335_v12, %v3331_v10 }
 0x77b   :  { %v3101_v55 = vpack.c.bf16 %v3337_v52, %v3333_v11 }
 0x77c   :  { %3116 = vst [vmem:[#allocation4 + $0x38] sm:$0xff] %v3096_v13  }
 0x77d   :  { %3102 = vst [vmem:[#allocation6] sm:$0xff] %v3101_v55  }
 0x77e   :  { %3349 = shalt.err (!%p3346_p4)
}
 0x77f   :  { %s3350_s28 = scalar_lea.hbm %s4274_s7, 1024 }
 0x780   :  { %p3351_p5 = scmp.ne.s32.totalorder %s4274_s7, %s3350_s28  ;;  %p3354_p6 = scmp.lt.u32.totalorder %s3350_s28, %s4274_s7 }
 0x782   :  { %p3356_p7 = pnand %p3354_p6, %p3351_p5 }
 0x784   :  { %3359 = shalt.err (!%p3356_p7)
}
 0x785   :  { %s3389_s10 = smov 64   ;;  %s3390_s11 = smov 4  }
 0x786   :  { %2652 = dma.vmem_to_hbm [thread:$0]  %s2647_s22, 1024, %s4274_s7, [#allocation5], %s3389_s10, %s3389_s10, %s3390_s11  }
 0x787   :  { %s3360_s13 = scalar_lea.vmem %s4236_s24, 1024  ;;  %p3365_p9 = scmp.lt.s32.totalorder %s4236_s24, %s4236_s24 }
 0x788   :  { %p3361_p8 = scmp.ne.s32.totalorder %s4236_s24, %s3360_s13  ;;  %p3366_p10 = scmp.lt.s32.totalorder %s3360_s13, %s3360_s13 }
 0x78a   :  { %p3367_p11 = por %p3366_p10, %p3365_p9 }
 0x78c   :  { %p3368_p12 = pnand %p3367_p11, %p3361_p8 }
 0x78e   :  { %3371 = shalt.err (!%p3368_p12)
}
 0x78f   :  { %s3372_s1 = scalar_lea.hbm %s4275_s8, 1024 }
 0x790   :  { %p3373_p13 = scmp.ne.s32.totalorder %s4275_s8, %s3372_s1  ;;  %p3376_p0 = scmp.lt.u32.totalorder %s3372_s1, %s4275_s8 }
 0x792   :  { %p3378_p1 = pnand %p3376_p0, %p3373_p13 }
 0x794   :  { %3381 = shalt.err (!%p3378_p1)
}
 0x795   :  { %2668 = dma.vmem_to_hbm [thread:$0]  %s4236_s24, 1024, %s4275_s8, [#allocation7], %s3389_s10, %s3389_s10, %s3390_s11  }
 0x796   :  { %3382 = dma.done.wait [#allocation5], 1024  }
 0x797   :  { %3383 = vsyncadd [#allocation5], 4294966272 }
 0x798   :  { %3384 = dma.done.wait [#allocation7], 1024  }
 0x799   :  { %3385 = vsyncadd [#allocation7], 4294966272 }
 0x79a   :  { %2675 = vsyncpa [#allocation5], 1 }
 0x79b   :  { %2676 = vsyncpa [#allocation7], 1 }

</bundles_post_ra>
